<compile_context>
chip_gen: v6e
topology: v6e:2x2x1
jax: 0.10.0
libtpu: 0.0.40
codegen_flags: <defaults>
</compile_context>

<pallas_src>
import jax
import jax.numpy as jnp
import numpy as np
from jax.experimental import pallas as pl
from jax.experimental.pallas import tpu as pltpu

INPUT_SIZE = 784
HIDDEN_SIZE = 256
LATENT_SIZE = 16

# Packed / padded lane widths used inside the kernel.
LAT_PAD = 128                 # padded latent width (z / eps)
ENC_PAD = 256                 # packed encoder head: mu block [0:128), logvar block [128:256)
LOGVAR_OFF = 128              # lane offset of log_var inside the packed encoder output
BIAS_TOTAL = 4 * HIDDEN_SIZE + ENC_PAD + INPUT_SIZE   # 2064

TILE_B = 512                  # default batch tile (fits all generations' VMEM comfortably)


def _round_up(n, m):
    return ((n + m - 1) // m) * m


def vae_kernel(x_ref, eps_ref, b_ref,
               ew1_ref, ew2_ref, ew3_ref, dw1_ref, dw2_ref, dw3_ref,
               xhat_ref, enc_ref):
    bf16, f32 = jnp.bfloat16, jnp.float32
    x = x_ref[...]                                   # [tb, 784] bf16

    # ---------------- encoder (bf16 MXU inputs, f32 accumulation) ----------------
    h = jnp.dot(x, ew1_ref[...], preferred_element_type=f32) + b_ref[:, 0:256]
    h = jnp.maximum(h, 0.0)
    h = jnp.dot(h.astype(bf16), ew2_ref[...], preferred_element_type=f32) + b_ref[:, 256:512]
    h = jnp.maximum(h, 0.0)
    # Packed head: lanes 0..15 = mu, lanes 128..143 = log_var, rest exactly 0.
    enc = jnp.dot(h.astype(bf16), ew3_ref[...], preferred_element_type=f32) + b_ref[:, 512:768]

    # ------------- reparameterize (f32 elementwise; pad lanes stay 0) -------------
    mu_pad = enc[:, 0:128]
    lv_pad = enc[:, 128:256]
    eps = eps_ref[...].astype(f32)                   # zero in lanes 16..127
    z = mu_pad + eps * jnp.exp(0.5 * lv_pad)         # [tb, 128]; lanes 16..127 == 0

    # ---------------- decoder ----------------
    d = jnp.dot(z.astype(bf16), dw1_ref[...], preferred_element_type=f32) + b_ref[:, 768:1024]
    d = jnp.maximum(d, 0.0)
    d = jnp.dot(d.astype(bf16), dw2_ref[...], preferred_element_type=f32) + b_ref[:, 1024:1280]
    d = jnp.maximum(d, 0.0)
    x_hat = jnp.dot(d.astype(bf16), dw3_ref[...], preferred_element_type=f32) + b_ref[:, 1280:2064]

    xhat_ref[...] = x_hat.astype(xhat_ref.dtype)     # [tb, 784] bf16 stream
    enc_ref[...] = enc                               # [tb, 256] f32 (mu / log_var source)


@jax.jit
def vae_forward(x, eps, packed):
    """x: [B, 784] f32, eps: [B, 16] f32, packed: output of prepare_params.

    Returns (x_hat [B,784] bf16, mu [B,16] f32, log_var [B,16] f32)."""
    bias_all, ew1, ew2, ew3, dw1, dw2, dw3 = packed
    batch = x.shape[0]
    bf16 = jnp.bfloat16

    # Batch tiling: >=2 grid iterations when possible (feeds both v7x TCs),
    # little padded-batch waste, bf16-friendly sublane alignment.
    b8 = _round_up(batch, 8)
    if b8 <= 16:
        tb = b8
    else:
        n_tiles = max(pl.cdiv(b8, TILE_B), 2)
        tb = min(_round_up(pl.cdiv(b8, n_tiles), 16), TILE_B)
    pb = _round_up(b8, tb)

    # Feed x / eps as bf16; pad batch rows only when necessary (no lane padding
    # of x, no extra HBM pass in the common case pb == batch).
    if pb == batch:
        xp = x.astype(bf16)
    else:
        xp = jnp.zeros((pb, INPUT_SIZE), bf16).at[:batch].set(x.astype(bf16))
    epsp = jnp.zeros((pb, LAT_PAD), bf16).at[:batch, :LATENT_SIZE].set(eps.astype(bf16))

    weight_bytes = sum(int(w.size) * 2 for w in (ew1, ew2, ew3, dw1, dw2, dw3))
    cost = pl.CostEstimate(
        flops=2 * pb * (INPUT_SIZE * HIDDEN_SIZE + 3 * HIDDEN_SIZE * HIDDEN_SIZE
                        + LAT_PAD * HIDDEN_SIZE + HIDDEN_SIZE * INPUT_SIZE),
        transcendentals=pb * LAT_PAD,
        bytes_accessed=(pb * INPUT_SIZE * 2 + pb * LAT_PAD * 2     # x, eps (bf16 in)
                        + pb * INPUT_SIZE * 2 + pb * ENC_PAD * 4   # x_hat (bf16), enc (f32)
                        + weight_bytes + int(bias_all.size) * 4),
    )

    xhat_p, enc_p = pl.pallas_call(
        vae_kernel,
        out_shape=(
            jax.ShapeDtypeStruct((pb, INPUT_SIZE), bf16),
            jax.ShapeDtypeStruct((pb, ENC_PAD), jnp.float32),
        ),
        grid_spec=pltpu.PrefetchScalarGridSpec(
            num_scalar_prefetch=0,
            grid=(pb // tb,),
            in_specs=[
                pl.BlockSpec((tb, INPUT_SIZE), lambda i: (i, 0)),             # x tile (bf16)
                pl.BlockSpec((tb, LAT_PAD), lambda i: (i, 0)),                # eps tile (bf16)
                pl.BlockSpec((1, BIAS_TOTAL), lambda i: (0, 0)),              # packed biases (resident)
                pl.BlockSpec((INPUT_SIZE, HIDDEN_SIZE), lambda i: (0, 0)),    # ew1 (resident)
                pl.BlockSpec((HIDDEN_SIZE, HIDDEN_SIZE), lambda i: (0, 0)),   # ew2
                pl.BlockSpec((HIDDEN_SIZE, ENC_PAD), lambda i: (0, 0)),       # ew3 (packed head)
                pl.BlockSpec((LAT_PAD, HIDDEN_SIZE), lambda i: (0, 0)),       # dw1 (padded K)
                pl.BlockSpec((HIDDEN_SIZE, HIDDEN_SIZE), lambda i: (0, 0)),   # dw2
                pl.BlockSpec((HIDDEN_SIZE, INPUT_SIZE), lambda i: (0, 0)),    # dw3
            ],
            out_specs=(
                pl.BlockSpec((tb, INPUT_SIZE), lambda i: (i, 0)),
                pl.BlockSpec((tb, ENC_PAD), lambda i: (i, 0)),
            ),
        ),
        compiler_params=pltpu.CompilerParams(
            dimension_semantics=("parallel",),
        ),
        cost_estimate=cost,
    )(xp, epsp, bias_all, ew1, ew2, ew3, dw1, dw2, dw3)

    if pb != batch:
        xhat_p = xhat_p[:batch]
        enc_p = enc_p[:batch]
    x_hat = xhat_p                                           # bf16; cast at the consumer if needed
    mu = enc_p[:, :LATENT_SIZE]
    log_var = enc_p[:, LOGVAR_OFF:LOGVAR_OFF + LATENT_SIZE]
    return x_hat, mu, log_var


def init_linear(key, fan_in, fan_out):
    """PyTorch nn.Linear default init: U(-1/sqrt(fan_in), 1/sqrt(fan_in))."""
    kw, kb = jax.random.split(key)
    bound = 1.0 / np.sqrt(fan_in)
    # Stored as [in, out] so the kernel computes x @ W.
    w = jax.random.uniform(kw, (fan_in, fan_out), jnp.float32, -bound, bound)
    b = jax.random.uniform(kb, (1, fan_out), jnp.float32, -bound, bound)
    return w, b


def init_params(key):
    keys = jax.random.split(key, 6)
    ew1, eb1 = init_linear(keys[0], INPUT_SIZE, HIDDEN_SIZE)
    ew2, eb2 = init_linear(keys[1], HIDDEN_SIZE, HIDDEN_SIZE)
    ew3, eb3 = init_linear(keys[2], HIDDEN_SIZE, LATENT_SIZE * 2)
    dw1, db1 = init_linear(keys[3], LATENT_SIZE, HIDDEN_SIZE)
    dw2, db2 = init_linear(keys[4], HIDDEN_SIZE, HIDDEN_SIZE)
    dw3, db3 = init_linear(keys[5], HIDDEN_SIZE, INPUT_SIZE)
    return (ew1, eb1, ew2, eb2, ew3, eb3, dw1, db1, dw2, db2, dw3, db3)


def prepare_params(raw):
    """Pad / pack raw f32 params into the lane-aligned bf16 kernel layout."""
    ew1, eb1, ew2, eb2, ew3, eb3, dw1, db1, dw2, db2, dw3, db3 = raw
    f32, bf16 = jnp.float32, jnp.bfloat16

    # encoder head: pack [256, 32] -> [256, 256]; mu in cols 0..15, logvar in cols 128..143
    ew3p = (jnp.zeros((HIDDEN_SIZE, ENC_PAD), f32)
            .at[:, :LATENT_SIZE].set(ew3[:, :LATENT_SIZE])
            .at[:, LOGVAR_OFF:LOGVAR_OFF + LATENT_SIZE].set(ew3[:, LATENT_SIZE:]))
    eb3p = (jnp.zeros((1, ENC_PAD), f32)
            .at[:, :LATENT_SIZE].set(eb3[:, :LATENT_SIZE])
            .at[:, LOGVAR_OFF:LOGVAR_OFF + LATENT_SIZE].set(eb3[:, LATENT_SIZE:]))
    # decoder L1: pad latent dim 16 -> 128 with zero rows (pad lanes of z are 0)
    dw1p = jnp.zeros((LAT_PAD, HIDDEN_SIZE), f32).at[:LATENT_SIZE, :].set(dw1)

    # one packed bias buffer: [eb1 | eb2 | eb3p | db1 | db2 | db3] = [1, 2064] f32
    bias_all = jnp.concatenate([eb1, eb2, eb3p, db1, db2, db3], axis=-1)
    assert bias_all.shape == (1, BIAS_TOTAL)

    # weights in bf16 (activations are cast to bf16 at each dot; accumulation stays f32)
    return (bias_all,
            ew1.astype(bf16), ew2.astype(bf16), ew3p.astype(bf16),
            dw1p.astype(bf16), dw2.astype(bf16), dw3.astype(bf16))


def vae_reference(x, eps, raw_params):
    """Pure-JAX reference mimicking the kernel's bf16 rounding of dot operands."""
    ew1, eb1, ew2, eb2, ew3, eb3, dw1, db1, dw2, db2, dw3, db3 = raw_params
    q = lambda a: a.astype(jnp.bfloat16).astype(jnp.float32)
    xq, epsq = q(x), q(eps)
    h = jnp.maximum(xq @ q(ew1) + eb1, 0.0)
    h = jnp.maximum(q(h) @ q(ew2) + eb2, 0.0)
    enc = q(h) @ q(ew3) + eb3
    mu, log_var = enc[:, :LATENT_SIZE], enc[:, LATENT_SIZE:]
    z = mu + epsq * jnp.exp(0.5 * log_var)
    d = jnp.maximum(q(z) @ q(dw1) + db1, 0.0)
    d = jnp.maximum(q(d) @ q(dw2) + db2, 0.0)
    x_hat = q(d) @ q(dw3) + db3
    return x_hat, mu, log_var


if __name__ == "__main__":
    key = jax.random.PRNGKey(0)
    k_params, k_x, k_eps = jax.random.split(key, 3)

    raw_params = init_params(k_params)
    packed = prepare_params(raw_params)

    batch = 8
    x = jax.random.uniform(k_x, (batch, INPUT_SIZE), jnp.float32)      # MNIST-like pixels in [0,1)
    eps = jax.random.normal(k_eps, (batch, LATENT_SIZE), jnp.float32)  # ~ torch.randn_like(std)

    x_hat, mu, log_var = vae_forward(x, eps, packed)
    jax.block_until_ready((x_hat, mu, log_var))

    # Sanity check against the pure-JAX reference (bf16 operand/stream tolerance).
    r_xhat, r_mu, r_logvar = vae_reference(x, eps, raw_params)
    np.testing.assert_allclose(np.asarray(x_hat.astype(jnp.float32)), np.asarray(r_xhat),
                               rtol=2e-2, atol=2e-2)
    np.testing.assert_allclose(np.asarray(mu), np.asarray(r_mu), rtol=2e-2, atol=2e-2)
    np.testing.assert_allclose(np.asarray(log_var), np.asarray(r_logvar), rtol=2e-2, atol=2e-2)

    print("KERNEL_OK")
</pallas_src>

<mosaic_0001>
module attributes {stable_mosaic.version = 11 : i64} {
  func.func @vae_kernel(%arg0: i32, %arg1: memref<8x784xbf16, #tpu.memory_space<vmem>>, %arg2: memref<8x128xbf16, #tpu.memory_space<vmem>>, %arg3: memref<1x2064xf32, #tpu.memory_space<vmem>>, %arg4: memref<784x256xbf16, #tpu.memory_space<vmem>>, %arg5: memref<256x256xbf16, #tpu.memory_space<vmem>>, %arg6: memref<256x256xbf16, #tpu.memory_space<vmem>>, %arg7: memref<128x256xbf16, #tpu.memory_space<vmem>>, %arg8: memref<256x256xbf16, #tpu.memory_space<vmem>>, %arg9: memref<256x784xbf16, #tpu.memory_space<vmem>>, %arg10: memref<8x784xbf16, #tpu.memory_space<vmem>>, %arg11: memref<8x256xf32, #tpu.memory_space<vmem>>) attributes {dimension_semantics = [#tpu.dimension_semantics<parallel>], iteration_bounds = array<i64: 1>, scalar_prefetch = 0 : i64, scratch_operands = 0 : i64, tpu.core_type = #tpu.core_type<tc>, window_params = [{transform_indices = @transform_0, window_bounds = array<i64: 8, 784>}, {transform_indices = @transform_1, window_bounds = array<i64: 8, 128>}, {pipeline_mode = #tpu.pipeline_mode<synchronous>, transform_indices = @transform_2, window_bounds = array<i64: 1, 2064>}, {pipeline_mode = #tpu.pipeline_mode<synchronous>, transform_indices = @transform_3, window_bounds = array<i64: 784, 256>}, {pipeline_mode = #tpu.pipeline_mode<synchronous>, transform_indices = @transform_4, window_bounds = array<i64: 256, 256>}, {pipeline_mode = #tpu.pipeline_mode<synchronous>, transform_indices = @transform_5, window_bounds = array<i64: 256, 256>}, {pipeline_mode = #tpu.pipeline_mode<synchronous>, transform_indices = @transform_6, window_bounds = array<i64: 128, 256>}, {pipeline_mode = #tpu.pipeline_mode<synchronous>, transform_indices = @transform_7, window_bounds = array<i64: 256, 256>}, {pipeline_mode = #tpu.pipeline_mode<synchronous>, transform_indices = @transform_8, window_bounds = array<i64: 256, 784>}, {transform_indices = @transform_9, window_bounds = array<i64: 8, 784>}, {transform_indices = @transform_10, window_bounds = array<i64: 8, 256>}]} {
    %c0 = arith.constant 0 : index
    %c0_0 = arith.constant 0 : index
    %0 = vector.load %arg1[%c0, %c0_0] : memref<8x784xbf16, #tpu.memory_space<vmem>>, vector<8x784xbf16>
    %c0_1 = arith.constant 0 : index
    %c0_2 = arith.constant 0 : index
    %1 = vector.load %arg4[%c0_1, %c0_2] : memref<784x256xbf16, #tpu.memory_space<vmem>>, vector<784x256xbf16>
    %cst = arith.constant dense<0.000000e+00> : vector<8x256xf32>
    %2 = tpu.matmul %0, %1, %cst {dimension_numbers = #tpu.dot_dimension_numbers<[1], [0], [0], [1], [0, 0, 1, 1], [], []>} : vector<8x784xbf16>, vector<784x256xbf16>, vector<8x256xf32> -> vector<8x256xf32>
    %c0_3 = arith.constant 0 : index
    %c0_4 = arith.constant 0 : index
    %3 = vector.load %arg3[%c0_3, %c0_4] : memref<1x2064xf32, #tpu.memory_space<vmem>>, vector<1x256xf32>
    %4 = vector.broadcast %3 : vector<1x256xf32> to vector<8x256xf32>
    %5 = arith.addf %2, %4 : vector<8x256xf32>
    %cst_5 = arith.constant 0.000000e+00 : f32
    %6 = vector.broadcast %cst_5 : f32 to vector<8x256xf32>
    %7 = arith.maximumf %5, %6 : vector<8x256xf32>
    %8 = arith.truncf %7 : vector<8x256xf32> to vector<8x256xbf16>
    %c0_6 = arith.constant 0 : index
    %c0_7 = arith.constant 0 : index
    %9 = vector.load %arg5[%c0_6, %c0_7] : memref<256x256xbf16, #tpu.memory_space<vmem>>, vector<256x256xbf16>
    %cst_8 = arith.constant dense<0.000000e+00> : vector<8x256xf32>
    %10 = tpu.matmul %8, %9, %cst_8 {dimension_numbers = #tpu.dot_dimension_numbers<[1], [0], [0], [1], [0, 0, 1, 1], [], []>} : vector<8x256xbf16>, vector<256x256xbf16>, vector<8x256xf32> -> vector<8x256xf32>
    %c0_9 = arith.constant 0 : index
    %c256 = arith.constant 256 : index
    %11 = vector.load %arg3[%c0_9, %c256] : memref<1x2064xf32, #tpu.memory_space<vmem>>, vector<1x256xf32>
    %12 = vector.broadcast %11 : vector<1x256xf32> to vector<8x256xf32>
    %13 = arith.addf %10, %12 : vector<8x256xf32>
    %cst_10 = arith.constant 0.000000e+00 : f32
    %14 = vector.broadcast %cst_10 : f32 to vector<8x256xf32>
    %15 = arith.maximumf %13, %14 : vector<8x256xf32>
    %16 = arith.truncf %15 : vector<8x256xf32> to vector<8x256xbf16>
    %c0_11 = arith.constant 0 : index
    %c0_12 = arith.constant 0 : index
    %17 = vector.load %arg6[%c0_11, %c0_12] : memref<256x256xbf16, #tpu.memory_space<vmem>>, vector<256x256xbf16>
    %cst_13 = arith.constant dense<0.000000e+00> : vector<8x256xf32>
    %18 = tpu.matmul %16, %17, %cst_13 {dimension_numbers = #tpu.dot_dimension_numbers<[1], [0], [0], [1], [0, 0, 1, 1], [], []>} : vector<8x256xbf16>, vector<256x256xbf16>, vector<8x256xf32> -> vector<8x256xf32>
    %c0_14 = arith.constant 0 : index
    %c512 = arith.constant 512 : index
    %19 = vector.load %arg3[%c0_14, %c512] : memref<1x2064xf32, #tpu.memory_space<vmem>>, vector<1x256xf32>
    %20 = vector.broadcast %19 : vector<1x256xf32> to vector<8x256xf32>
    %21 = arith.addf %18, %20 : vector<8x256xf32>
    %22 = vector.extract_strided_slice %21 {offsets = [0, 0], sizes = [8, 128], strides = [1, 1]} : vector<8x256xf32> to vector<8x128xf32>
    %23 = vector.extract_strided_slice %21 {offsets = [0, 128], sizes = [8, 128], strides = [1, 1]} : vector<8x256xf32> to vector<8x128xf32>
    %c0_15 = arith.constant 0 : index
    %c0_16 = arith.constant 0 : index
    %24 = vector.load %arg2[%c0_15, %c0_16] : memref<8x128xbf16, #tpu.memory_space<vmem>>, vector<8x128xbf16>
    %25 = arith.extf %24 : vector<8x128xbf16> to vector<8x128xf32>
    %cst_17 = arith.constant 5.000000e-01 : f32
    %26 = vector.broadcast %cst_17 : f32 to vector<8x128xf32>
    %27 = arith.mulf %26, %23 : vector<8x128xf32>
    %28 = math.exp %27 : vector<8x128xf32>
    %29 = arith.mulf %25, %28 : vector<8x128xf32>
    %30 = arith.addf %22, %29 : vector<8x128xf32>
    %31 = arith.truncf %30 : vector<8x128xf32> to vector<8x128xbf16>
    %c0_18 = arith.constant 0 : index
    %c0_19 = arith.constant 0 : index
    %32 = vector.load %arg7[%c0_18, %c0_19] : memref<128x256xbf16, #tpu.memory_space<vmem>>, vector<128x256xbf16>
    %cst_20 = arith.constant dense<0.000000e+00> : vector<8x256xf32>
    %33 = tpu.matmul %31, %32, %cst_20 {dimension_numbers = #tpu.dot_dimension_numbers<[1], [0], [0], [1], [0, 0, 1, 1], [], []>} : vector<8x128xbf16>, vector<128x256xbf16>, vector<8x256xf32> -> vector<8x256xf32>
    %c0_21 = arith.constant 0 : index
    %c768 = arith.constant 768 : index
    %34 = vector.load %arg3[%c0_21, %c768] : memref<1x2064xf32, #tpu.memory_space<vmem>>, vector<1x256xf32>
    %35 = vector.broadcast %34 : vector<1x256xf32> to vector<8x256xf32>
    %36 = arith.addf %33, %35 : vector<8x256xf32>
    %cst_22 = arith.constant 0.000000e+00 : f32
    %37 = vector.broadcast %cst_22 : f32 to vector<8x256xf32>
    %38 = arith.maximumf %36, %37 : vector<8x256xf32>
    %39 = arith.truncf %38 : vector<8x256xf32> to vector<8x256xbf16>
    %c0_23 = arith.constant 0 : index
    %c0_24 = arith.constant 0 : index
    %40 = vector.load %arg8[%c0_23, %c0_24] : memref<256x256xbf16, #tpu.memory_space<vmem>>, vector<256x256xbf16>
    %cst_25 = arith.constant dense<0.000000e+00> : vector<8x256xf32>
    %41 = tpu.matmul %39, %40, %cst_25 {dimension_numbers = #tpu.dot_dimension_numbers<[1], [0], [0], [1], [0, 0, 1, 1], [], []>} : vector<8x256xbf16>, vector<256x256xbf16>, vector<8x256xf32> -> vector<8x256xf32>
    %c0_26 = arith.constant 0 : index
    %c1024 = arith.constant 1024 : index
    %42 = vector.load %arg3[%c0_26, %c1024] : memref<1x2064xf32, #tpu.memory_space<vmem>>, vector<1x256xf32>
    %43 = vector.broadcast %42 : vector<1x256xf32> to vector<8x256xf32>
    %44 = arith.addf %41, %43 : vector<8x256xf32>
    %cst_27 = arith.constant 0.000000e+00 : f32
    %45 = vector.broadcast %cst_27 : f32 to vector<8x256xf32>
    %46 = arith.maximumf %44, %45 : vector<8x256xf32>
    %47 = arith.truncf %46 : vector<8x256xf32> to vector<8x256xbf16>
    %c0_28 = arith.constant 0 : index
    %c0_29 = arith.constant 0 : index
    %48 = vector.load %arg9[%c0_28, %c0_29] : memref<256x784xbf16, #tpu.memory_space<vmem>>, vector<256x784xbf16>
    %cst_30 = arith.constant dense<0.000000e+00> : vector<8x784xf32>
    %49 = tpu.matmul %47, %48, %cst_30 {dimension_numbers = #tpu.dot_dimension_numbers<[1], [0], [0], [1], [0, 0, 1, 1], [], []>} : vector<8x256xbf16>, vector<256x784xbf16>, vector<8x784xf32> -> vector<8x784xf32>
    %c0_31 = arith.constant 0 : index
    %c1280 = arith.constant 1280 : index
    %50 = vector.load %arg3[%c0_31, %c1280] : memref<1x2064xf32, #tpu.memory_space<vmem>>, vector<1x784xf32>
    %51 = vector.broadcast %50 : vector<1x784xf32> to vector<8x784xf32>
    %52 = arith.addf %49, %51 : vector<8x784xf32>
    %53 = arith.truncf %52 : vector<8x784xf32> to vector<8x784xbf16>
    %c0_32 = arith.constant 0 : index
    %c0_33 = arith.constant 0 : index
    %54 = vector.load %arg10[%c0_32, %c0_33] : memref<8x784xbf16, #tpu.memory_space<vmem>>, vector<8x784xbf16>
    tpu.vector_store %arg10[%c0_32, %c0_33], %53 {strides = array<i32>} : memref<8x784xbf16, #tpu.memory_space<vmem>>, vector<8x784xbf16>,
    %c0_34 = arith.constant 0 : index
    %c0_35 = arith.constant 0 : index
    %55 = vector.load %arg11[%c0_34, %c0_35] : memref<8x256xf32, #tpu.memory_space<vmem>>, vector<8x256xf32>
    tpu.vector_store %arg11[%c0_34, %c0_35], %21 {strides = array<i32>} : memref<8x256xf32, #tpu.memory_space<vmem>>, vector<8x256xf32>,
    return
  }
  func.func @transform_0(%arg0: i32) -> (i32, i32) {
    %c0_i32 = arith.constant 0 : i32
    %c0_i32_0 = arith.constant 0 : i32
    return %arg0, %c0_i32 : i32, i32
  }
  func.func @transform_1(%arg0: i32) -> (i32, i32) {
    %c0_i32 = arith.constant 0 : i32
    %c0_i32_0 = arith.constant 0 : i32
    return %arg0, %c0_i32 : i32, i32
  }
  func.func @transform_2(%arg0: i32) -> (i32, i32) {
    %c0_i32 = arith.constant 0 : i32
    %c0_i32_0 = arith.constant 0 : i32
    %c0_i32_1 = arith.constant 0 : i32
    return %c0_i32, %c0_i32_0 : i32, i32
  }
  func.func @transform_3(%arg0: i32) -> (i32, i32) {
    %c0_i32 = arith.constant 0 : i32
    %c0_i32_0 = arith.constant 0 : i32
    %c0_i32_1 = arith.constant 0 : i32
    return %c0_i32, %c0_i32_0 : i32, i32
  }
  func.func @transform_4(%arg0: i32) -> (i32, i32) {
    %c0_i32 = arith.constant 0 : i32
    %c0_i32_0 = arith.constant 0 : i32
    %c0_i32_1 = arith.constant 0 : i32
    return %c0_i32, %c0_i32_0 : i32, i32
  }
  func.func @transform_5(%arg0: i32) -> (i32, i32) {
    %c0_i32 = arith.constant 0 : i32
    %c0_i32_0 = arith.constant 0 : i32
    %c0_i32_1 = arith.constant 0 : i32
    return %c0_i32, %c0_i32_0 : i32, i32
  }
  func.func @transform_6(%arg0: i32) -> (i32, i32) {
    %c0_i32 = arith.constant 0 : i32
    %c0_i32_0 = arith.constant 0 : i32
    %c0_i32_1 = arith.constant 0 : i32
    return %c0_i32, %c0_i32_0 : i32, i32
  }
  func.func @transform_7(%arg0: i32) -> (i32, i32) {
    %c0_i32 = arith.constant 0 : i32
    %c0_i32_0 = arith.constant 0 : i32
    %c0_i32_1 = arith.constant 0 : i32
    return %c0_i32, %c0_i32_0 : i32, i32
  }
  func.func @transform_8(%arg0: i32) -> (i32, i32) {
    %c0_i32 = arith.constant 0 : i32
    %c0_i32_0 = arith.constant 0 : i32
    %c0_i32_1 = arith.constant 0 : i32
    return %c0_i32, %c0_i32_0 : i32, i32
  }
  func.func @transform_9(%arg0: i32) -> (i32, i32) {
    %c0_i32 = arith.constant 0 : i32
    %c0_i32_0 = arith.constant 0 : i32
    return %arg0, %c0_i32 : i32, i32
  }
  func.func @transform_10(%arg0: i32) -> (i32, i32) {
    %c0_i32 = arith.constant 0 : i32
    %c0_i32_0 = arith.constant 0 : i32
    return %arg0, %c0_i32 : i32, i32
  }
}

</mosaic_0001>

<bundles_post_ra>
// kernel: vae_forward.1
= control target key start
LH: loop header
LB: loop body
LE: loop exit
PB: predicated region body
PF: predicated region fallthrough
CT: control target
= control target key end

     0   :  { %vm664_vm0 = vcmask 130048   ;;  %s4670_s0 = inlined_call_operand.vmem [shape: bf16[8,784], index: 0, kind: input, shape index: {}]   ;;  %s4671_s1 = inlined_call_operand.vmem [shape: bf16[8,128], index: 1, kind: input, shape index: {}]   ;;  %s4672_s2 = inlined_call_operand.vmem [shape: f32[1,2064], index: 2, kind: input, shape index: {}]   ;;  %s4673_s3 = inlined_call_operand.vmem [shape: bf16[784,256], index: 3, kind: input, shape index: {}]   ;;  %s4674_s4 = inlined_call_operand.vmem [shape: bf16[256,256], index: 4, kind: input, shape index: {}]   ;;  %s4675_s5 = inlined_call_operand.vmem [shape: bf16[256,256], index: 5, kind: input, shape index: {}]   ;;  %s4676_s6 = inlined_call_operand.vmem [shape: bf16[128,256], index: 6, kind: input, shape index: {}]   ;;  %s4677_s7 = inlined_call_operand.vmem [shape: bf16[256,256], index: 7, kind: input, shape index: {}]   ;;  %s4678_s8 = inlined_call_operand.vmem [shape: bf16[256,784], index: 8, kind: input, shape index: {}]   ;;  %s4679_s9 = inlined_call_operand.hbm [shape: bf16[8,784], index: 9, kind: output, shape index: {0}]   ;;  %s4680_s10 = inlined_call_operand.vmem [shape: f32[8,256], index: 10, kind: output, shape index: {1}]  }
   0x1   :  { %v3060_v0 = vld [vmem:[%s4673_s3 + $0x74] ss:$8 sps:$4 sm:$0xff]   ;;  %v3062_v1 = vld [vmem:[%s4673_s3 + $0x70] ss:$8 sps:$4 sm:$0xff]   ;;  %v3066_v4 = vld [vmem:[%s4673_s3 + $0x64] ss:$8 sps:$4 sm:$0xff]  }
   0x2   :  { %668 = vmatprep.subr.bf16.mxu0 %v3060_v0  ;;  %v3063_v2 = vld [vmem:[%s4673_s3 + $0x174] ss:$8 sps:$4 sm:$0xff]   ;;  %v3065_v3 = vld [vmem:[%s4673_s3 + $0x170] ss:$8 sps:$4 sm:$0xff]   ;;  %v3068_v5 = vld [vmem:[%s4673_s3 + $0x60] ss:$8 sps:$4 sm:$0xff]  }
   0x3   :  { %669 = vmatpush1.bf16.msra.mxu0 %v3062_v1  ;;  %709 = vmatprep.subr.bf16.mxu1 %v3063_v2  ;;  %v3069_v6 = vld [vmem:[%s4673_s3 + $0x164] ss:$8 sps:$4 sm:$0xff]   ;;  %v3071_v7 = vld [vmem:[%s4673_s3 + $0x160] ss:$8 sps:$4 sm:$0xff]   ;;  %v3072_v8 = vld [vmem:[%s4673_s3 + $0x54] ss:$8 sps:$4 sm:$0xff]  }
   0x4   :  { %710 = vmatpush1.bf16.msra.mxu1 %v3065_v3  ;;  %670 = vmatprep.subr.bf16.mxu0 %v3066_v4  ;;  %v3074_v9 = vld [vmem:[%s4673_s3 + $0x50] ss:$8 sps:$4 sm:$0xff]   ;;  %v3075_v10 = vld [vmem:[%s4673_s3 + $0x154] ss:$8 sps:$4 sm:$0xff]   ;;  %v3078_v11 = vld [vmem:[%s4673_s3 + $0x44] ss:$8 sps:$4 sm:$0xff]  }
   0x5   :  { %711 = vmatprep.subr.bf16.mxu1 %v3069_v6  ;;  %v3077_v12 = vld [vmem:[%s4673_s3 + $0x150] ss:$8 sps:$4 sm:$0xff]   ;;  %v3081_v13 = vld [vmem:[%s4673_s3 + $0x144] ss:$8 sps:$4 sm:$0xff]   ;;  %v3080_v14 = vld [vmem:[%s4673_s3 + $0x40] ss:$8 sps:$4 sm:$0xff]  }
   0x6   :  { %v3084_v15 = vld [vmem:[%s4673_s3 + $0x34] ss:$8 sps:$4 sm:$0xff]   ;;  %v3083_v16 = vld [vmem:[%s4673_s3 + $0x140] ss:$8 sps:$4 sm:$0xff]   ;;  %v3086_v18 = vld [vmem:[%s4673_s3 + $0x30] ss:$8 sps:$4 sm:$0xff]  }
   0x7   :  { %671 = vmatpush1.bf16.msra.mxu0 %v3068_v5  ;;  %v3087_v17 = vld [vmem:[%s4673_s3 + $0x134] ss:$8 sps:$4 sm:$0xff]   ;;  %v3090_v19 = vld [vmem:[%s4673_s3 + $0x24] ss:$8 sps:$4 sm:$0xff]   ;;  %v3089_v20 = vld [vmem:[%s4673_s3 + $0x130] ss:$8 sps:$4 sm:$0xff]  }
   0x8   :  { %672 = vmatprep.subr.bf16.mxu0 %v3072_v8  ;;  %712 = vmatpush1.bf16.msra.mxu1 %v3071_v7  ;;  %v3093_v21 = vld [vmem:[%s4673_s3 + $0x124] ss:$8 sps:$4 sm:$0xff]   ;;  %v3092_v22 = vld [vmem:[%s4673_s3 + $0x20] ss:$8 sps:$4 sm:$0xff]   ;;  %v3096_v23 = vld [vmem:[%s4673_s3 + $0x14] ss:$8 sps:$4 sm:$0xff]  }
   0x9   :  { %713 = vmatprep.subr.bf16.mxu1 %v3075_v10  ;;  %v3095_v24 = vld [vmem:[%s4673_s3 + $0x120] ss:$8 sps:$4 sm:$0xff]   ;;  %v3099_v25 = vld [vmem:[%s4673_s3 + $0x114] ss:$8 sps:$4 sm:$0xff]   ;;  %v3098_v26 = vld [vmem:[%s4673_s3 + $0x10] ss:$8 sps:$4 sm:$0xff]  }
   0xa   :  { %v3102_v27 = vld [vmem:[%s4673_s3 + $0x4] ss:$8 sps:$4 sm:$0xff]   ;;  %v3101_v28 = vld [vmem:[%s4673_s3 + $0x110] ss:$8 sps:$4 sm:$0xff]   ;;  %v3104_v30 = vld [vmem:[%s4673_s3] ss:$8 sps:$4 sm:$0xff]  }
   0xb   :  { %673 = vmatpush1.bf16.msra.mxu0 %v3074_v9  ;;  %v3105_v29 = vld [vmem:[%s4673_s3 + $0x104] ss:$8 sps:$4 sm:$0xff]   ;;  %v3108_v31 = vld [vmem:[%s4673_s3 + $0xf4] ss:$8 sps:$4 sm:$0xff]   ;;  %v3107_v32 = vld [vmem:[%s4673_s3 + $0x100] ss:$8 sps:$4 sm:$0xff]  }
   0xc   :  { %674 = vmatprep.subr.bf16.mxu0 %v3078_v11  ;;  %714 = vmatpush1.bf16.msra.mxu1 %v3077_v12  ;;  %v3111_v33 = vld [vmem:[%s4673_s3 + $0x1f4] ss:$8 sps:$4 sm:$0xff]   ;;  %v3110_v34 = vld [vmem:[%s4673_s3 + $0xf0] ss:$8 sps:$4 sm:$0xff]   ;;  %v3114_v35 = vld [vmem:[%s4673_s3 + $0xe4] ss:$8 sps:$4 sm:$0xff]  }
   0xd   :  { %715 = vmatprep.subr.bf16.mxu1 %v3081_v13  ;;  %v3113_v36 = vld [vmem:[%s4673_s3 + $0x1f0] ss:$8 sps:$4 sm:$0xff]   ;;  %v3117_v37 = vld [vmem:[%s4673_s3 + $0x1e4] ss:$8 sps:$4 sm:$0xff]   ;;  %v3116_v38 = vld [vmem:[%s4673_s3 + $0xe0] ss:$8 sps:$4 sm:$0xff]  }
   0xe   :  { %v3120_v39 = vld [vmem:[%s4673_s3 + $0xd4] ss:$8 sps:$4 sm:$0xff]   ;;  %v3119_v40 = vld [vmem:[%s4673_s3 + $0x1e0] ss:$8 sps:$4 sm:$0xff]   ;;  %v3122_v42 = vld [vmem:[%s4673_s3 + $0xd0] ss:$8 sps:$4 sm:$0xff]  }
   0xf   :  { %675 = vmatpush1.bf16.msra.mxu0 %v3080_v14  ;;  %v3123_v41 = vld [vmem:[%s4673_s3 + $0x1d4] ss:$8 sps:$4 sm:$0xff]   ;;  %v3126_v43 = vld [vmem:[%s4673_s3 + $0xc4] ss:$8 sps:$4 sm:$0xff]   ;;  %v3125_v44 = vld [vmem:[%s4673_s3 + $0x1d0] ss:$8 sps:$4 sm:$0xff]  }
  0x10   :  { %676 = vmatprep.subr.bf16.mxu0 %v3084_v15  ;;  %716 = vmatpush1.bf16.msra.mxu1 %v3083_v16  ;;  %v3129_v45 = vld [vmem:[%s4673_s3 + $0x1c4] ss:$8 sps:$4 sm:$0xff]   ;;  %v3128_v47 = vld [vmem:[%s4673_s3 + $0xc0] ss:$8 sps:$4 sm:$0xff]   ;;  %v3132_v49 = vld [vmem:[%s4673_s3 + $0xb4] ss:$8 sps:$4 sm:$0xff]  }
  0x11   :  { %717 = vmatprep.subr.bf16.mxu1 %v3087_v17  ;;  %v36_v46 = vld [vmem:[%s4670_s0] sm:$0xff]  ;;  %v37_v50 = vld [vmem:[%s4670_s0 + $0x8] sm:$0xff]  ;;  %v3135_v53 = vld [vmem:[%s4673_s3 + $0x1b4] ss:$8 sps:$4 sm:$0xff]   ;;  %v3566_v16 = vmov 0  }
  0x12   :  { %v2699_v48 = vcombine.high %v36_v46, %v36_v46  ;;  %v3131_v51 = vld [vmem:[%s4673_s3 + $0x1c0] ss:$8 sps:$4 sm:$0xff]   ;;  %v2701_v52 = vcombine.high %v37_v50, %v37_v50  ;;  %v3134_v54 = vld [vmem:[%s4673_s3 + $0xb0] ss:$8 sps:$4 sm:$0xff]   ;;  %v3138_v55 = vld [vmem:[%s4673_s3 + $0xa4] ss:$8 sps:$4 sm:$0xff]   ;;  %v2698_v5 = vcombine.low %v36_v46, %v36_v46  ;;  %v2700_v7 = vcombine.low %v37_v50, %v37_v50 }
  0x13   :  { %677 = vmatpush1.bf16.msra.mxu0 %v3086_v18  ;;  %v3137_v56 = vld [vmem:[%s4673_s3 + $0x1b0] ss:$8 sps:$4 sm:$0xff]   ;;  %v3141_v57 = vld [vmem:[%s4673_s3 + $0x1a4] ss:$8 sps:$4 sm:$0xff]   ;;  %v3140_v58 = vld [vmem:[%s4673_s3 + $0xa0] ss:$8 sps:$4 sm:$0xff]  }
  0x14   :  { %678 = vmatprep.subr.bf16.mxu0 %v3090_v19  ;;  %718 = vmatpush1.bf16.msra.mxu1 %v3089_v20  ;;  %v3144_v59 = vld [vmem:[%s4673_s3 + $0x94] ss:$8 sps:$4 sm:$0xff]   ;;  %v3143_v60 = vld [vmem:[%s4673_s3 + $0x1a0] ss:$8 sps:$4 sm:$0xff]   ;;  %v3146_v62 = vld [vmem:[%s4673_s3 + $0x90] ss:$8 sps:$4 sm:$0xff]  }
  0x15   :  { %719 = vmatprep.subr.bf16.mxu1 %v3093_v21  ;;  %700 = vmatprep.mubr.bf16.mxu0 %v2699_v48  ;;  %v3147_v61 = vld [vmem:[%s4673_s3 + $0x194] ss:$8 sps:$4 sm:$0xff]   ;;  %v3150_v63 = vld [vmem:[%s4673_s3 + $0x84] ss:$8 sps:$4 sm:$0xff]   ;;  %v3149_v0 = vld [vmem:[%s4673_s3 + $0x190] ss:$8 sps:$4 sm:$0xff]  }
  0x16   :  { %741 = vmatprep.mubr.bf16.mxu1 %v2701_v52  ;;  %v3153_v1 = vld [vmem:[%s4673_s3 + $0x184] ss:$8 sps:$4 sm:$0xff]   ;;  %v3152_v2 = vld [vmem:[%s4673_s3 + $0x80] ss:$8 sps:$4 sm:$0xff]   ;;  %v3160_v3 = vld [vmem:[%s4673_s3 + $0x274] ss:$8 sps:$4 sm:$0xff]  }
  0x17   :  { %679 = vmatpush1.bf16.msra.mxu0 %v3092_v22  ;;  %v3157_v4 = vld [vmem:[%s4673_s3 + $0x180] ss:$8 sps:$4 sm:$0xff]   ;;  %v3158_v6 = vld [vmem:[%s4673_s3 + $0x270] ss:$8 sps:$4 sm:$0xff]   ;;  %v3165_v8 = vld [vmem:[%s4673_s3 + $0x264] ss:$8 sps:$4 sm:$0xff]  }
  0x18   :  { %680 = vmatprep.subr.bf16.mxu0 %v3096_v23  ;;  %720 = vmatpush1.bf16.msra.mxu1 %v3095_v24  ;;  %v3207_v9 = vld [vmem:[%s4673_s3 + $0x304] ss:$8 sps:$4 sm:$0xff]   ;;  %v3205_v10 = vld [vmem:[%s4673_s3 + $0x300] ss:$8 sps:$4 sm:$0xff]   ;;  %v3842_v12 = vld [vmem:[%s4670_s0 + $0x10] sm:$0xff] }
  0x19   :  { %721 = vmatprep.subr.bf16.mxu1 %v3099_v25  ;;  %v3163_v11 = vld [vmem:[%s4673_s3 + $0x260] ss:$8 sps:$4 sm:$0xff]   ;;  %v3168_v13 = vld [vmem:[%s4673_s3 + $0x254] ss:$8 sps:$4 sm:$0xff]   ;;  %v2703_v14 = vcombine.high %v3842_v12, %v3842_v12  ;;  %v3166_v15 = vld [vmem:[%s4673_s3 + $0x250] ss:$8 sps:$4 sm:$0xff]  }
  0x1a   :  { %v3171_v17 = vld [vmem:[%s4673_s3 + $0x244] ss:$8 sps:$4 sm:$0xff]   ;;  %v3211_v18 = vld [vmem:[%s4670_s0 + $0x18] ss:$0 sps:$4 sm:$0xff]   ;;  %v3169_v19 = vld [vmem:[%s4673_s3 + $0x240] ss:$8 sps:$4 sm:$0xff]  }
  0x1b   :  { %681 = vmatpush1.bf16.msra.mxu0 %v3098_v26  ;;  %v3174_v20 = vld [vmem:[%s4673_s3 + $0x234] ss:$8 sps:$4 sm:$0xff]   ;;  %v3172_v21 = vld [vmem:[%s4673_s3 + $0x230] ss:$8 sps:$4 sm:$0xff]   ;;  %v3177_v22 = vld [vmem:[%s4673_s3 + $0x224] ss:$8 sps:$4 sm:$0xff]  }
  0x1c   :  { %682 = vmatprep.subr.bf16.mxu0 %v3102_v27  ;;  %722 = vmatpush1.bf16.msra.mxu1 %v3101_v28  ;;  %v3175_v23 = vld [vmem:[%s4673_s3 + $0x220] ss:$8 sps:$4 sm:$0xff]   ;;  %v3180_v24 = vld [vmem:[%s4673_s3 + $0x214] ss:$8 sps:$4 sm:$0xff]   ;;  %v3178_v25 = vld [vmem:[%s4673_s3 + $0x210] ss:$8 sps:$4 sm:$0xff]  }
  0x1d   :  { %723 = vmatprep.subr.bf16.mxu1 %v3105_v29  ;;  %v3183_v26 = vld [vmem:[%s4673_s3 + $0x204] ss:$8 sps:$4 sm:$0xff]   ;;  %v3181_v27 = vld [vmem:[%s4673_s3 + $0x200] ss:$8 sps:$4 sm:$0xff]   ;;  %v3186_v28 = vld [vmem:[%s4673_s3 + $0x2f4] ss:$8 sps:$4 sm:$0xff]  }
  0x1e   :  { %v3184_v29 = vld [vmem:[%s4673_s3 + $0x2f0] ss:$8 sps:$4 sm:$0xff]   ;;  %v3216_v46 = vld [vmem:[%s4674_s4 + $0x74] ss:$8 sps:$4 sm:$0xff]   ;;  %v3217_v48 = vld [vmem:[%s4674_s4 + $0x60] ss:$8 sps:$4 sm:$0xff]  }
  0x1f   :  { %683 = vmatpush1.bf16.msra.mxu0 %v3104_v30  ;;  %v3189_v30 = vld [vmem:[%s4673_s3 + $0x2e4] ss:$8 sps:$4 sm:$0xff]   ;;  %v3220_v50 = vld [vmem:[%s4674_s4 + $0x50] ss:$8 sps:$4 sm:$0xff]   ;;  %v3223_v52 = vld [vmem:[%s4674_s4 + $0x40] ss:$8 sps:$4 sm:$0xff]  }
  0x20   :  { %684 = vmatprep.subr.bf16.mxu0 %v3108_v31  ;;  %724 = vmatpush1.bf16.msra.mxu1 %v3107_v32  ;;  %v3187_v31 = vld [vmem:[%s4673_s3 + $0x2e0] ss:$8 sps:$4 sm:$0xff]   ;;  %v3192_v32 = vld [vmem:[%s4673_s3 + $0x2d4] ss:$8 sps:$4 sm:$0xff]  }
  0x21   :  { %725 = vmatprep.subr.bf16.mxu1 %v3111_v33  ;;  %v3190_v33 = vld [vmem:[%s4673_s3 + $0x2d0] ss:$8 sps:$4 sm:$0xff]  }
  0x23   :  { %685 = vmatpush2.bf16.msra.mxu0 %v3110_v34  ;;  %v3195_v34 = vld [vmem:[%s4673_s3 + $0x2c4] ss:$8 sps:$4 sm:$0xff]  }
  0x24   :  { %686 = vmatprep.subr.bf16.mxu0 %v3114_v35  ;;  %726 = vmatpush2.bf16.msra.mxu1 %v3113_v36  ;;  %v3193_v35 = vld [vmem:[%s4673_s3 + $0x2c0] ss:$8 sps:$4 sm:$0xff]   ;;  %v3198_v36 = vld [vmem:[%s4673_s3 + $0x2b4] ss:$8 sps:$4 sm:$0xff]  }
  0x25   :  { %727 = vmatprep.subr.bf16.mxu1 %v3117_v37  ;;  %v3196_v37 = vld [vmem:[%s4673_s3 + $0x2b0] ss:$8 sps:$4 sm:$0xff]  }
  0x27   :  { %687 = vmatpush2.bf16.msra.mxu0 %v3116_v38  ;;  %v3201_v38 = vld [vmem:[%s4673_s3 + $0x2a4] ss:$8 sps:$4 sm:$0xff]  }
  0x28   :  { %688 = vmatprep.subr.bf16.mxu0 %v3120_v39  ;;  %728 = vmatpush2.bf16.msra.mxu1 %v3119_v40  ;;  %v3199_v39 = vld [vmem:[%s4673_s3 + $0x2a0] ss:$8 sps:$4 sm:$0xff]   ;;  %v3204_v40 = vld [vmem:[%s4673_s3 + $0x294] ss:$8 sps:$4 sm:$0xff]  }
  0x29   :  { %729 = vmatprep.subr.bf16.mxu1 %v3123_v41  ;;  %v3202_v41 = vld [vmem:[%s4673_s3 + $0x290] ss:$8 sps:$4 sm:$0xff]  }
  0x2b   :  { %689 = vmatpush2.bf16.msra.mxu0 %v3122_v42  ;;  %v3210_v42 = vld [vmem:[%s4673_s3 + $0x284] ss:$8 sps:$4 sm:$0xff]  }
  0x2c   :  { %690 = vmatprep.subr.bf16.mxu0 %v3126_v43  ;;  %730 = vmatpush2.bf16.msra.mxu1 %v3125_v44  ;;  %v3208_v43 = vld [vmem:[%s4673_s3 + $0x280] ss:$8 sps:$4 sm:$0xff]   ;;  %v2702_v44 = vcombine.low %v3842_v12, %v3842_v12 }
  0x2d   :  { %731 = vmatprep.subr.bf16.mxu1 %v3129_v45  ;;  %v3214_v45 = vld [vmem:[%s4674_s4 + $0x70] ss:$8 sps:$4 sm:$0xff]  }
  0x2f   :  { %691 = vmatpush2.bf16.msra.mxu0 %v3128_v47  ;;  %v3219_v47 = vld [vmem:[%s4674_s4 + $0x64] ss:$8 sps:$4 sm:$0xff]  }
  0x30   :  { %692 = vmatprep.subr.bf16.mxu0 %v3132_v49  ;;  %732 = vmatpush2.bf16.msra.mxu1 %v3131_v51  ;;  %v3222_v49 = vld [vmem:[%s4674_s4 + $0x54] ss:$8 sps:$4 sm:$0xff]   ;;  %v3225_v51 = vld [vmem:[%s4674_s4 + $0x44] ss:$8 sps:$4 sm:$0xff]  }
  0x31   :  { %733 = vmatprep.subr.bf16.mxu1 %v3135_v53  ;;  %v3228_v53 = vld [vmem:[%s4674_s4 + $0x34] ss:$8 sps:$4 sm:$0xff]  }
  0x33   :  { %693 = vmatpush2.bf16.msra.mxu0 %v3134_v54  ;;  %v3226_v54 = vld [vmem:[%s4674_s4 + $0x30] ss:$8 sps:$4 sm:$0xff]  }
  0x34   :  { %694 = vmatprep.subr.bf16.mxu0 %v3138_v55  ;;  %734 = vmatpush2.bf16.msra.mxu1 %v3137_v56  ;;  %v3231_v55 = vld [vmem:[%s4674_s4 + $0x24] ss:$8 sps:$4 sm:$0xff]   ;;  %v3229_v56 = vld [vmem:[%s4674_s4 + $0x20] ss:$8 sps:$4 sm:$0xff]  }
  0x35   :  { %735 = vmatprep.subr.bf16.mxu1 %v3141_v57  ;;  %v3234_v57 = vld [vmem:[%s4674_s4 + $0x14] ss:$8 sps:$4 sm:$0xff]  }
  0x37   :  { %695 = vmatpush2.bf16.msra.mxu0 %v3140_v58 }
  0x38   :  { %696 = vmatprep.subr.bf16.mxu0 %v3144_v59  ;;  %736 = vmatpush2.bf16.msra.mxu1 %v3143_v60 }
  0x39   :  { %737 = vmatprep.subr.bf16.mxu1 %v3147_v61 }
  0x3b   :  { %697 = vmatpush2.bf16.msra.mxu0 %v3146_v62 }
  0x3c   :  { %698 = vmatprep.subr.bf16.mxu0 %v3150_v63  ;;  %738 = vmatpush2.bf16.msra.mxu1 %v3149_v0 }
  0x3d   :  { %739 = vmatprep.subr.bf16.mxu1 %v3153_v1 }
  0x3f   :  { %699 = vmatpush2.bf16.msra.mxu0 %v3152_v2 }
  0x40   :  { %750 = vmatprep.subr.bf16.mxu0 %v3160_v3  ;;  %740 = vmatpush2.bf16.msra.mxu1 %v3157_v4 }
  0x41   :  { %805 = vmatprep.subr.bf16.mxu1 %v3207_v9 }
  0x42   :  { %701 = vmatmul.mubr.bf16.vlgmr.msra.gmra.mxu0 %v2698_v5 }
  0x43   :  { %751 = vmatpush1.bf16.msra.mxu0 %v3158_v6  ;;  %742 = vmatmul.mubr.bf16.vlgmr.msra.gmra.mxu1 %v2700_v7 }
  0x44   :  { %752 = vmatprep.subr.bf16.mxu0 %v3165_v8  ;;  %806 = vmatpush1.bf16.msra.mxu1 %v3205_v10 }
  0x45   :  { %823 = vmatprep.mubr.bf16.mxu1 %v3566_v16  ;;  %782 = vmatprep.mubr.bf16.mxu0 %v2703_v14 }
  0x46   :  { %1040 = vmatprep.subr.bf16.mxu1 %v3216_v46 }
  0x47   :  { %753 = vmatpush1.bf16.msra.mxu0 %v3163_v11 }
  0x48   :  { %754 = vmatprep.subr.bf16.mxu0 %v3168_v13 }
  0x4b   :  { %755 = vmatpush1.bf16.msra.mxu0 %v3166_v15  ;;  %2803 = vmatmul.mubr.msk.bf16.vlgmr.msra.gmra.mxu1 %vm664_vm0, %v3211_v18 }
  0x4c   :  { %756 = vmatprep.subr.bf16.mxu0 %v3171_v17  ;;  %1041 = vmatpush1.bf16.msra.mxu1 %v3214_v45 }
  0x4d   :  { %1042 = vmatprep.subr.bf16.mxu1 %v3219_v47 }
  0x4f   :  { %757 = vmatpush1.bf16.msra.mxu0 %v3169_v19 }
  0x50   :  { %758 = vmatprep.subr.bf16.mxu0 %v3174_v20  ;;  %1043 = vmatpush1.bf16.msra.mxu1 %v3217_v48 }
  0x51   :  { %1044 = vmatprep.subr.bf16.mxu1 %v3222_v49 }
  0x53   :  { %759 = vmatpush1.bf16.msra.mxu0 %v3172_v21 }
  0x54   :  { %760 = vmatprep.subr.bf16.mxu0 %v3177_v22  ;;  %1045 = vmatpush1.bf16.msra.mxu1 %v3220_v50 }
  0x55   :  { %1046 = vmatprep.subr.bf16.mxu1 %v3225_v51 }
  0x57   :  { %761 = vmatpush1.bf16.msra.mxu0 %v3175_v23 }
  0x58   :  { %762 = vmatprep.subr.bf16.mxu0 %v3180_v24  ;;  %1047 = vmatpush1.bf16.msra.mxu1 %v3223_v52 }
  0x59   :  { %1048 = vmatprep.subr.bf16.mxu1 %v3228_v53 }
  0x5b   :  { %763 = vmatpush1.bf16.msra.mxu0 %v3178_v25 }
  0x5c   :  { %764 = vmatprep.subr.bf16.mxu0 %v3183_v26  ;;  %1049 = vmatpush1.bf16.msra.mxu1 %v3226_v54 }
  0x5d   :  { %1050 = vmatprep.subr.bf16.mxu1 %v3231_v55 }
  0x5f   :  { %765 = vmatpush1.bf16.msra.mxu0 %v3181_v27 }
  0x60   :  { %766 = vmatprep.subr.bf16.mxu0 %v3186_v28 }
  0x63   :  { %767 = vmatpush2.bf16.msra.mxu0 %v3184_v29 }
  0x64   :  { %768 = vmatprep.subr.bf16.mxu0 %v3189_v30 }
  0x67   :  { %769 = vmatpush2.bf16.msra.mxu0 %v3187_v31 }
  0x68   :  { %770 = vmatprep.subr.bf16.mxu0 %v3192_v32 }
  0x6b   :  { %771 = vmatpush2.bf16.msra.mxu0 %v3190_v33 }
  0x6c   :  { %772 = vmatprep.subr.bf16.mxu0 %v3195_v34 }
  0x6f   :  { %773 = vmatpush2.bf16.msra.mxu0 %v3193_v35 }
  0x70   :  { %774 = vmatprep.subr.bf16.mxu0 %v3198_v36 }
  0x73   :  { %775 = vmatpush2.bf16.msra.mxu0 %v3196_v37 }
  0x74   :  { %776 = vmatprep.subr.bf16.mxu0 %v3201_v38 }
  0x77   :  { %777 = vmatpush2.bf16.msra.mxu0 %v3199_v39 }
  0x78   :  { %778 = vmatprep.subr.bf16.mxu0 %v3204_v40 }
  0x7b   :  { %779 = vmatpush2.bf16.msra.mxu0 %v3202_v41 }
  0x7c   :  { %780 = vmatprep.subr.bf16.mxu0 %v3210_v42 }
  0x7f   :  { %781 = vmatpush2.bf16.msra.mxu0 %v3208_v43 }
  0x82   :  { %783 = vmatmul.mubr.bf16.vlgmr.msra.gmra.mxu0 %v2702_v44 }
  0x83   :  { %16 = vsyncpa [#allocation3], 0  ;;  %1051 = vmatpush1.bf16.msra.mxu1 %v3229_v56  ;;  %v3232_v58 = vld [vmem:[%s4674_s4 + $0x10] ss:$8 sps:$4 sm:$0xff]   ;;  %v3237_v59 = vld [vmem:[%s4674_s4 + $0x4] ss:$8 sps:$4 sm:$0xff]   ;;  %v140_v54 = vlaneseq }
  0x84   :  { %1052 = vmatprep.subr.bf16.mxu1 %v3234_v57  ;;  %v3235_v60 = vld [vmem:[%s4674_s4] ss:$8 sps:$4 sm:$0xff]   ;;  %v3240_v61 = vld [vmem:[%s4674_s4 + $0xf4] ss:$8 sps:$4 sm:$0xff]   ;;  %v3238_v62 = vld [vmem:[%s4674_s4 + $0xf0] ss:$8 sps:$4 sm:$0xff]  }
  0x85   :  { %v3243_v63 = vld [vmem:[%s4674_s4 + $0xe4] ss:$8 sps:$4 sm:$0xff]   ;;  %v3241_v0 = vld [vmem:[%s4674_s4 + $0xe0] ss:$8 sps:$4 sm:$0xff]   ;;  %v3246_v1 = vld [vmem:[%s4674_s4 + $0xd4] ss:$8 sps:$4 sm:$0xff]  }
  0x86   :  { %v3244_v2 = vld [vmem:[%s4674_s4 + $0xd0] ss:$8 sps:$4 sm:$0xff]   ;;  %v3249_v3 = vld [vmem:[%s4674_s4 + $0xc4] ss:$8 sps:$4 sm:$0xff]   ;;  %v3247_v4 = vld [vmem:[%s4674_s4 + $0xc0] ss:$8 sps:$4 sm:$0xff]  }
  0x87   :  { %1053 = vmatpush1.bf16.msra.mxu1 %v3232_v58  ;;  %v3252_v5 = vld [vmem:[%s4674_s4 + $0xb4] ss:$8 sps:$4 sm:$0xff]   ;;  %v3250_v6 = vld [vmem:[%s4674_s4 + $0xb0] ss:$8 sps:$4 sm:$0xff]   ;;  %v3255_v7 = vld [vmem:[%s4674_s4 + $0xa4] ss:$8 sps:$4 sm:$0xff]  }
  0x88   :  { %1054 = vmatprep.subr.bf16.mxu1 %v3237_v59  ;;  %v3253_v8 = vld [vmem:[%s4674_s4 + $0xa0] ss:$8 sps:$4 sm:$0xff]   ;;  %v3258_v9 = vld [vmem:[%s4674_s4 + $0x94] ss:$8 sps:$4 sm:$0xff]   ;;  %v3256_v10 = vld [vmem:[%s4674_s4 + $0x90] ss:$8 sps:$4 sm:$0xff]  }
  0x89   :  { %v3261_v11 = vld [vmem:[%s4674_s4 + $0x84] ss:$8 sps:$4 sm:$0xff]   ;;  %v3259_v12 = vld [vmem:[%s4674_s4 + $0x80] ss:$8 sps:$4 sm:$0xff]   ;;  %v3262_v13 = vld [vmem:[%s4675_s5 + $0x70] ss:$8 sps:$4 sm:$0xff]  }
  0x8a   :  { %v3264_v14 = vld [vmem:[%s4675_s5 + $0x74] ss:$8 sps:$4 sm:$0xff]   ;;  %v3267_v15 = vld [vmem:[%s4675_s5 + $0x64] ss:$8 sps:$4 sm:$0xff]   ;;  %v3265_v17 = vld [vmem:[%s4675_s5 + $0x60] ss:$8 sps:$4 sm:$0xff]  }
  0x8b   :  { %1055 = vmatpush1.bf16.msra.mxu1 %v3235_v60  ;;  %1289 = vmatprep.subr.bf16.mxu0 %v3264_v14  ;;  %v3270_v18 = vld [vmem:[%s4675_s5 + $0x54] ss:$8 sps:$4 sm:$0xff]   ;;  %v3268_v19 = vld [vmem:[%s4675_s5 + $0x50] ss:$8 sps:$4 sm:$0xff]   ;;  %v3273_v20 = vld [vmem:[%s4675_s5 + $0x44] ss:$8 sps:$4 sm:$0xff]  }
  0x8c   :  { %1056 = vmatprep.subr.bf16.mxu1 %v3240_v61  ;;  %1290 = vmatpush1.bf16.msra.mxu0 %v3262_v13  ;;  %v3271_v21 = vld [vmem:[%s4675_s5 + $0x40] ss:$8 sps:$4 sm:$0xff]   ;;  %v3276_v22 = vld [vmem:[%s4675_s5 + $0x34] ss:$8 sps:$4 sm:$0xff]   ;;  %v3274_v23 = vld [vmem:[%s4675_s5 + $0x30] ss:$8 sps:$4 sm:$0xff]  }
  0x8d   :  { %1291 = vmatprep.subr.bf16.mxu0 %v3267_v15  ;;  %v3279_v24 = vld [vmem:[%s4675_s5 + $0x24] ss:$8 sps:$4 sm:$0xff]   ;;  %v3277_v25 = vld [vmem:[%s4675_s5 + $0x20] ss:$8 sps:$4 sm:$0xff]   ;;  %v3282_v26 = vld [vmem:[%s4675_s5 + $0x14] ss:$8 sps:$4 sm:$0xff]  }
  0x8e   :  { %v3280_v27 = vld [vmem:[%s4675_s5 + $0x10] ss:$8 sps:$4 sm:$0xff]   ;;  %v3285_v28 = vld [vmem:[%s4675_s5 + $0x4] ss:$8 sps:$4 sm:$0xff]   ;;  %v3283_v29 = vld [vmem:[%s4675_s5] ss:$8 sps:$4 sm:$0xff]  }
  0x8f   :  { %1057 = vmatpush2.bf16.msra.mxu1 %v3238_v62  ;;  %v3288_v30 = vld [vmem:[%s4675_s5 + $0xf4] ss:$8 sps:$4 sm:$0xff]   ;;  %v3286_v31 = vld [vmem:[%s4675_s5 + $0xf0] ss:$8 sps:$4 sm:$0xff]   ;;  %v3291_v32 = vld [vmem:[%s4675_s5 + $0xe4] ss:$8 sps:$4 sm:$0xff]  }
  0x90   :  { %1058 = vmatprep.subr.bf16.mxu1 %v3243_v63  ;;  %1292 = vmatpush1.bf16.msra.mxu0 %v3265_v17  ;;  %v3289_v33 = vld [vmem:[%s4675_s5 + $0xe0] ss:$8 sps:$4 sm:$0xff]   ;;  %v3294_v34 = vld [vmem:[%s4675_s5 + $0xd4] ss:$8 sps:$4 sm:$0xff]   ;;  %v3292_v35 = vld [vmem:[%s4675_s5 + $0xd0] ss:$8 sps:$4 sm:$0xff]  }
  0x91   :  { %1293 = vmatprep.subr.bf16.mxu0 %v3270_v18  ;;  %v3297_v36 = vld [vmem:[%s4675_s5 + $0xc4] ss:$8 sps:$4 sm:$0xff]   ;;  %v3295_v37 = vld [vmem:[%s4675_s5 + $0xc0] ss:$8 sps:$4 sm:$0xff]   ;;  %v3300_v38 = vld [vmem:[%s4675_s5 + $0xb4] ss:$8 sps:$4 sm:$0xff]  }
  0x92   :  { %v3298_v39 = vld [vmem:[%s4675_s5 + $0xb0] ss:$8 sps:$4 sm:$0xff]   ;;  %v3303_v40 = vld [vmem:[%s4675_s5 + $0xa4] ss:$8 sps:$4 sm:$0xff]   ;;  %v3301_v41 = vld [vmem:[%s4675_s5 + $0xa0] ss:$8 sps:$4 sm:$0xff]  }
  0x93   :  { %1059 = vmatpush2.bf16.msra.mxu1 %v3241_v0  ;;  %v4116_v55 = vshrl.u32 %v140_v54, 7  ;;  %v138_v57 = vld [vmem:[%s4672_s2] sm:$0x3]  ;;  %v3306_v13 = vld [vmem:[%s4675_s5 + $0x94] ss:$8 sps:$4 sm:$0xff]   ;;  %vm2676_vm1 = vcmask 125952  }
  0x94   :  { %1060 = vmatprep.subr.bf16.mxu1 %v3246_v1  ;;  %1294 = vmatpush1.bf16.msra.mxu0 %v3268_v19  ;;  %v3304_v14 = vld [vmem:[%s4675_s5 + $0x90] ss:$8 sps:$4 sm:$0xff]   ;;  %v3309_v15 = vld [vmem:[%s4675_s5 + $0x84] ss:$8 sps:$4 sm:$0xff]   ;;  %v3307_v17 = vld [vmem:[%s4675_s5 + $0x80] ss:$8 sps:$4 sm:$0xff]  }
  0x95   :  { %1295 = vmatprep.subr.bf16.mxu0 %v3273_v20  ;;  %v4119_v56 = vsub.s32 0, %v4116_v55  ;;  %v4125_v58 = vsub.s32 1, %v4116_v55  ;;  %v3312_v18 = vld [vmem:[%s4676_s6 + $0x74] ss:$8 sps:$4 sm:$0xff]   ;;  %v868_v19 = vld [vmem:[%s4672_s2 + $0x2] sm:$0x3] }
  0x97   :  { %1061 = vmatpush2.bf16.msra.mxu1 %v3244_v2  ;;  %v143_v59 = vrot.slane %v138_v57, %v4119_v56  ;;  %v147_v60 = vrot.slane %v138_v57, %v4125_v58  ;;  %v873_v20 = vrot.slane %v868_v19, %v4119_v56 }
  0x98   :  { %1062 = vmatprep.subr.bf16.mxu1 %v3249_v3  ;;  %1296 = vmatpush1.bf16.msra.mxu0 %v3271_v21  ;;  %v877_v21 = vrot.slane %v868_v19, %v4125_v58  ;;  %v3358_v19 = vld [vmem:[%s4677_s7 + $0xf0] ss:$8 sps:$4 sm:$0xff]  }
  0x99   :  { %1297 = vmatprep.subr.bf16.mxu0 %v3276_v22 }
  0x9b   :  { %1063 = vmatpush2.bf16.msra.mxu1 %v3247_v4 }
  0x9c   :  { %1064 = vmatprep.subr.bf16.mxu1 %v3252_v5  ;;  %1298 = vmatpush1.bf16.msra.mxu0 %v3274_v23 }
  0x9d   :  { %1299 = vmatprep.subr.bf16.mxu0 %v3279_v24 }
  0x9f   :  { %1065 = vmatpush2.bf16.msra.mxu1 %v3250_v6 }
  0xa0   :  { %1066 = vmatprep.subr.bf16.mxu1 %v3255_v7  ;;  %1300 = vmatpush1.bf16.msra.mxu0 %v3277_v25 }
  0xa1   :  { %1301 = vmatprep.subr.bf16.mxu0 %v3282_v26 }
  0xa3   :  { %1067 = vmatpush2.bf16.msra.mxu1 %v3253_v8 }
  0xa4   :  { %1068 = vmatprep.subr.bf16.mxu1 %v3258_v9  ;;  %1302 = vmatpush1.bf16.msra.mxu0 %v3280_v27 }
  0xa5   :  { %1303 = vmatprep.subr.bf16.mxu0 %v3285_v28 }
  0xa7   :  { %1069 = vmatpush2.bf16.msra.mxu1 %v3256_v10 }
  0xa8   :  { %1070 = vmatprep.subr.bf16.mxu1 %v3261_v11  ;;  %1304 = vmatpush1.bf16.msra.mxu0 %v3283_v29 }
  0xa9   :  { %1305 = vmatprep.subr.bf16.mxu0 %v3288_v30 }
  0xab   :  { %1071 = vmatpush2.bf16.msra.mxu1 %v3259_v12 }
  0xac   :  { %1306 = vmatpush2.bf16.msra.mxu0 %v3286_v31  ;;  %1446 = vmatprep.subr.bf16.mxu1 %v3312_v18  ;;  %v3360_v18 = vld [vmem:[%s4677_s7 + $0xf4] ss:$8 sps:$4 sm:$0xff]  }
  0xad   :  { %1307 = vmatprep.subr.bf16.mxu0 %v3291_v32  ;;  %v3315_v32 = vld [vmem:[%s4676_s6 + $0x64] ss:$8 sps:$4 sm:$0xff]  }
  0xb0   :  { %1308 = vmatpush2.bf16.msra.mxu0 %v3289_v33  ;;  %v3313_v33 = vld [vmem:[%s4676_s6 + $0x60] ss:$8 sps:$4 sm:$0xff]  }
  0xb1   :  { %1309 = vmatprep.subr.bf16.mxu0 %v3294_v34  ;;  %v3318_v34 = vld [vmem:[%s4676_s6 + $0x54] ss:$8 sps:$4 sm:$0xff]  }
  0xb4   :  { %1310 = vmatpush2.bf16.msra.mxu0 %v3292_v35  ;;  %v3316_v35 = vld [vmem:[%s4676_s6 + $0x50] ss:$8 sps:$4 sm:$0xff]  }
  0xb5   :  { %1311 = vmatprep.subr.bf16.mxu0 %v3297_v36  ;;  %v3321_v36 = vld [vmem:[%s4676_s6 + $0x44] ss:$8 sps:$4 sm:$0xff]  }
  0xb8   :  { %1312 = vmatpush2.bf16.msra.mxu0 %v3295_v37  ;;  %v3319_v37 = vld [vmem:[%s4676_s6 + $0x40] ss:$8 sps:$4 sm:$0xff]  }
  0xb9   :  { %1313 = vmatprep.subr.bf16.mxu0 %v3300_v38  ;;  %v3324_v38 = vld [vmem:[%s4676_s6 + $0x34] ss:$8 sps:$4 sm:$0xff]  }
  0xbc   :  { %1314 = vmatpush2.bf16.msra.mxu0 %v3298_v39  ;;  %v3322_v39 = vld [vmem:[%s4676_s6 + $0x30] ss:$8 sps:$4 sm:$0xff]  }
  0xbd   :  { %1315 = vmatprep.subr.bf16.mxu0 %v3303_v40  ;;  %v3327_v40 = vld [vmem:[%s4676_s6 + $0x24] ss:$8 sps:$4 sm:$0xff]  }
  0xc0   :  { %1316 = vmatpush2.bf16.msra.mxu0 %v3301_v41  ;;  %v3325_v41 = vld [vmem:[%s4676_s6 + $0x20] ss:$8 sps:$4 sm:$0xff]  }
  0xc1   :  { %1317 = vmatprep.subr.bf16.mxu0 %v3306_v13  ;;  %v3349_v13 = vld [vmem:[%s4677_s7 + $0x20] ss:$8 sps:$4 sm:$0xff]  }
  0xc4   :  { %1318 = vmatpush2.bf16.msra.mxu0 %v3304_v14  ;;  %v3354_v14 = vld [vmem:[%s4677_s7 + $0x14] ss:$8 sps:$4 sm:$0xff]  }
  0xc5   :  { %1319 = vmatprep.subr.bf16.mxu0 %v3309_v15  ;;  %v3352_v15 = vld [vmem:[%s4677_s7 + $0x10] ss:$8 sps:$4 sm:$0xff]  }
  0xc8   :  { %1320 = vmatpush2.bf16.msra.mxu0 %v3307_v17  ;;  %v3357_v17 = vld [vmem:[%s4677_s7 + $0x4] ss:$8 sps:$4 sm:$0xff]  }
 0x102   :  { %v702_v42 = vpop.f32.mrf.mxu0 }
 0x103   :  { %v743_v44 = vpop.f32.mrf.mxu1  ;;  %v703_v61 = vadd.f32 %v702_v42, %v143_v59  ;;  %v3330_v42 = vld [vmem:[%s4676_s6 + $0x14] ss:$8 sps:$4 sm:$0xff]  }
 0x104   :  { %v704_v43 = vpop.f32.mrf.mxu0 }
 0x105   :  { %v745_v46 = vpop.f32.mrf.mxu1  ;;  %v705_v62 = vadd.f32 %v704_v43, %v147_v60  ;;  %v744_v63 = vadd.f32 %v743_v44, %v703_v61  ;;  %v3328_v43 = vld [vmem:[%s4676_s6 + $0x10] ss:$8 sps:$4 sm:$0xff]   ;;  %v3333_v44 = vld [vmem:[%s4676_s6 + $0x4] ss:$8 sps:$4 sm:$0xff]   ;;  %v1330_v61 = vld [vmem:[%s4671_s1] sm:$0xf] }
 0x106   :  { %v706_v45 = vpop.f32.mrf.mxu0 }
 0x107   :  { %v747_v48 = vpop.f32.mrf.mxu1  ;;  %v746_v1 = vadd.f32 %v745_v46, %v705_v62  ;;  %v3331_v45 = vld [vmem:[%s4676_s6] ss:$8 sps:$4 sm:$0xff]   ;;  %v3336_v46 = vld [vmem:[%s4677_s7 + $0x74] ss:$8 sps:$4 sm:$0xff]   ;;  %v1331_v62 = vunpack.c.l.bf16 %v1330_v61 }
 0x108   :  { %v707_v47 = vpop.f32.mrf.mxu0  ;;  %v3448_v61 = vld [vmem:[%s4678_s8 + $0x2a0] ss:$28 sps:$4 sm:$0xff]  }
 0x109   :  { %v748_v49 = vpop.f32.mrf.mxu1  ;;  %v1117_v47 = vld [vmem:[%s4672_s2 + $0x4] sm:$0x3] }
 0x10a   :  { %v1122_v48 = vrot.slane %v1117_v47, %v4119_v56  ;;  %v1126_v49 = vrot.slane %v1117_v47, %v4125_v58  ;;  %v3420_v47 = vld [vmem:[%s4678_s8 + $0x3c] ss:$28 sps:$4 sm:$0xff]  }
 0x10b   :  { %v825_v50 = vpop.f32.mrf.mxu1 }
 0x10d   :  { %v827_v51 = vpop.f32.mrf.mxu1 }
 0x10f   :  { %v829_v52 = vpop.f32.mrf.mxu1 }
 0x111   :  { %v830_v53 = vpop.f32.mrf.mxu1 }
 0x142   :  { %v784_v0 = vpop.f32.mrf.mxu0 }
 0x143   :  { %v785_v2 = vadd.f32 %v784_v0, %v744_v63 }
 0x144   :  { %v786_v3 = vpop.f32.mrf.mxu0 }
 0x145   :  { %v826_v4 = vadd.f32 %v825_v50, %v785_v2  ;;  %v787_v5 = vadd.f32 %v786_v3, %v746_v1  ;;  %v3334_v2 = vld [vmem:[%s4677_s7 + $0x70] ss:$8 sps:$4 sm:$0xff]  }
 0x146   :  { %v788_v6 = vpop.f32.mrf.mxu0 }
 0x147   :  { %v828_v7 = vadd.f32 %v827_v51, %v787_v5  ;;  %v832_v8 = vmax.f32 %v826_v4, 0.0  ;;  %v3339_v4 = vld [vmem:[%s4677_s7 + $0x64] ss:$8 sps:$4 sm:$0xff]   ;;  %v3337_v5 = vld [vmem:[%s4677_s7 + $0x60] ss:$8 sps:$4 sm:$0xff]  }
 0x148   :  { %v789_v9 = vpop.f32.mrf.mxu0  ;;  %v3342_v6 = vld [vmem:[%s4677_s7 + $0x54] ss:$8 sps:$4 sm:$0xff]  }
 0x149   :  { %v833_v10 = vmax.f32 %v828_v7, 0.0  ;;  %v834_v12 = vpack.c.bf16 %v832_v8, %v832_v8  ;;  %v3340_v7 = vld [vmem:[%s4677_s7 + $0x50] ss:$8 sps:$4 sm:$0xff]   ;;  %v3345_v8 = vld [vmem:[%s4677_s7 + $0x44] ss:$8 sps:$4 sm:$0xff]  }
 0x14a   :  { %v3343_v9 = vld [vmem:[%s4677_s7 + $0x40] ss:$8 sps:$4 sm:$0xff]  }
 0x14b   :  { %v835_v11 = vpack.c.bf16 %v833_v10, %v833_v10  ;;  %v3348_v10 = vld [vmem:[%s4677_s7 + $0x34] ss:$8 sps:$4 sm:$0xff]  }
 0x14d   :  { %1072 = vmatprep.mubr.bf16.mxu1 %v835_v11  ;;  %v3346_v11 = vld [vmem:[%s4677_s7 + $0x30] ss:$8 sps:$4 sm:$0xff]  }
 0x14e   :  { %1073 = vmatmul.mubr.bf16.vlgmr.msra.gmra.mxu1 %v834_v12  ;;  %v3351_v12 = vld [vmem:[%s4677_s7 + $0x24] ss:$8 sps:$4 sm:$0xff]  }
 0x14f   :  { %1478 = vmatprep.mubr.bf16.mxu1 %v3566_v16  ;;  %v3310_v16 = vld [vmem:[%s4676_s6 + $0x70] ss:$8 sps:$4 sm:$0xff]  }
 0x150   :  { %1447 = vmatpush1.bf16.msra.mxu1 %v3310_v16  ;;  %v3355_v16 = vld [vmem:[%s4677_s7] ss:$8 sps:$4 sm:$0xff]  }
 0x151   :  { %1448 = vmatprep.subr.bf16.mxu1 %v3315_v32  ;;  %v3381_v32 = vld [vmem:[%s4677_s7 + $0x84] ss:$8 sps:$4 sm:$0xff]  }
 0x154   :  { %1449 = vmatpush1.bf16.msra.mxu1 %v3313_v33  ;;  %v3379_v33 = vld [vmem:[%s4677_s7 + $0x80] ss:$8 sps:$4 sm:$0xff]  }
 0x155   :  { %1450 = vmatprep.subr.bf16.mxu1 %v3318_v34  ;;  %v3382_v34 = vld [vmem:[%s4678_s8 + $0x188] ss:$28 sps:$4 sm:$0xff]  }
 0x158   :  { %1451 = vmatpush1.bf16.msra.mxu1 %v3316_v35  ;;  %v3384_v35 = vld [vmem:[%s4678_s8 + $0x18c] ss:$28 sps:$4 sm:$0xff]  }
 0x159   :  { %1452 = vmatprep.subr.bf16.mxu1 %v3321_v36  ;;  %v3387_v36 = vld [vmem:[%s4678_s8 + $0x194] ss:$28 sps:$4 sm:$0xff]   ;;  %2481 = vmatprep.subr.bf16.mxu0 %v3384_v35  ;;  %v3445_v35 = vld [vmem:[%s4678_s8 + $0x2e0] ss:$28 sps:$4 sm:$0xff]  }
 0x15c   :  { %1453 = vmatpush1.bf16.msra.mxu1 %v3319_v37  ;;  %v3390_v37 = vld [vmem:[%s4678_s8 + $0x154] ss:$28 sps:$4 sm:$0xff]  }
 0x15d   :  { %1454 = vmatprep.subr.bf16.mxu1 %v3324_v38  ;;  %v3388_v38 = vld [vmem:[%s4678_s8 + $0x150] ss:$28 sps:$4 sm:$0xff]  }
 0x160   :  { %1455 = vmatpush1.bf16.msra.mxu1 %v3322_v39  ;;  %v3396_v39 = vld [vmem:[%s4678_s8 + $0x11c] ss:$28 sps:$4 sm:$0xff]  }
 0x161   :  { %1456 = vmatprep.subr.bf16.mxu1 %v3327_v40  ;;  %v3394_v40 = vld [vmem:[%s4678_s8 + $0x118] ss:$28 sps:$4 sm:$0xff]  }
 0x164   :  { %1457 = vmatpush1.bf16.msra.mxu1 %v3325_v41  ;;  %v3402_v41 = vld [vmem:[%s4678_s8 + $0xe4] ss:$28 sps:$4 sm:$0xff]  }
 0x165   :  { %1458 = vmatprep.subr.bf16.mxu1 %v3330_v42  ;;  %v3400_v42 = vld [vmem:[%s4678_s8 + $0xe0] ss:$28 sps:$4 sm:$0xff]  }
 0x168   :  { %1459 = vmatpush1.bf16.msra.mxu1 %v3328_v43  ;;  %v3408_v43 = vld [vmem:[%s4678_s8 + $0xac] ss:$28 sps:$4 sm:$0xff]  }
 0x169   :  { %1460 = vmatprep.subr.bf16.mxu1 %v3333_v44  ;;  %v3406_v44 = vld [vmem:[%s4678_s8 + $0xa8] ss:$28 sps:$4 sm:$0xff]  }
 0x16c   :  { %1461 = vmatpush1.bf16.msra.mxu1 %v3331_v45  ;;  %v3414_v45 = vld [vmem:[%s4678_s8 + $0x74] ss:$28 sps:$4 sm:$0xff]  }
 0x16d   :  { %1695 = vmatprep.subr.bf16.mxu1 %v3336_v46  ;;  %v3412_v46 = vld [vmem:[%s4678_s8 + $0x70] ss:$28 sps:$4 sm:$0xff]  }
 0x20e   :  { %v1074_v22 = vpop.f32.mrf.mxu1 }
 0x20f   :  { %v1075_v23 = vadd.f32 %v1074_v22, %v873_v20  ;;  %v3363_v20 = vld [vmem:[%s4677_s7 + $0xe4] ss:$8 sps:$4 sm:$0xff]   ;;  %v3366_v22 = vld [vmem:[%s4677_s7 + $0xd4] ss:$8 sps:$4 sm:$0xff]  }
 0x210   :  { %v1076_v24 = vpop.f32.mrf.mxu1 }
 0x211   :  { %v1077_v25 = vadd.f32 %v1076_v24, %v877_v21  ;;  %v1081_v26 = vmax.f32 %v1075_v23, 0.0  ;;  %v3361_v21 = vld [vmem:[%s4677_s7 + $0xe0] ss:$8 sps:$4 sm:$0xff]   ;;  %v3364_v23 = vld [vmem:[%s4677_s7 + $0xd0] ss:$8 sps:$4 sm:$0xff]  }
 0x212   :  { %v1078_v27 = vpop.f32.mrf.mxu1  ;;  %v3369_v24 = vld [vmem:[%s4677_s7 + $0xc4] ss:$8 sps:$4 sm:$0xff]  }
 0x213   :  { %v1082_v28 = vmax.f32 %v1077_v25, 0.0  ;;  %v1083_v31 = vpack.c.bf16 %v1081_v26, %v1081_v26  ;;  %v3367_v25 = vld [vmem:[%s4677_s7 + $0xc0] ss:$8 sps:$4 sm:$0xff]   ;;  %v3372_v26 = vld [vmem:[%s4677_s7 + $0xb4] ss:$8 sps:$4 sm:$0xff]  }
 0x214   :  { %v1079_v29 = vpop.f32.mrf.mxu1  ;;  %v3370_v27 = vld [vmem:[%s4677_s7 + $0xb0] ss:$8 sps:$4 sm:$0xff]  }
 0x215   :  { %v1084_v30 = vpack.c.bf16 %v1082_v28, %v1082_v28  ;;  %v3375_v28 = vld [vmem:[%s4677_s7 + $0xa4] ss:$8 sps:$4 sm:$0xff]   ;;  %v3373_v29 = vld [vmem:[%s4677_s7 + $0xa0] ss:$8 sps:$4 sm:$0xff]  }
 0x217   :  { %1321 = vmatprep.mubr.bf16.mxu0 %v1084_v30  ;;  %v3378_v30 = vld [vmem:[%s4677_s7 + $0x94] ss:$8 sps:$4 sm:$0xff]  }
 0x218   :  { %1322 = vmatmul.mubr.bf16.vlgmr.msra.gmra.mxu0 %v1083_v31  ;;  %v3376_v31 = vld [vmem:[%s4677_s7 + $0x90] ss:$8 sps:$4 sm:$0xff]  }
 0x219   :  { %2482 = vmatpush1.bf16.msra.mxu0 %v3382_v34  ;;  %v3447_v34 = vld [vmem:[%s4678_s8 + $0x2e4] ss:$28 sps:$4 sm:$0xff]  }
 0x21a   :  { %2483 = vmatprep.subr.bf16.mxu0 %v3390_v37  ;;  %v3451_v37 = vld [vmem:[%s4678_s8 + $0x2a8] ss:$28 sps:$4 sm:$0xff]  }
 0x21d   :  { %2484 = vmatpush1.bf16.msra.mxu0 %v3388_v38  ;;  %v3459_v38 = vld [vmem:[%s4678_s8 + $0x274] ss:$28 sps:$4 sm:$0xff]  }
 0x21e   :  { %2485 = vmatprep.subr.bf16.mxu0 %v3396_v39  ;;  %v3457_v39 = vld [vmem:[%s4678_s8 + $0x270] ss:$28 sps:$4 sm:$0xff]  }
 0x221   :  { %2486 = vmatpush1.bf16.msra.mxu0 %v3394_v40  ;;  %v3465_v40 = vld [vmem:[%s4678_s8 + $0x23c] ss:$28 sps:$4 sm:$0xff]  }
 0x222   :  { %2487 = vmatprep.subr.bf16.mxu0 %v3402_v41  ;;  %v3463_v41 = vld [vmem:[%s4678_s8 + $0x238] ss:$28 sps:$4 sm:$0xff]  }
 0x225   :  { %2488 = vmatpush1.bf16.msra.mxu0 %v3400_v42  ;;  %v3468_v42 = vld [vmem:[%s4678_s8 + $0x1fc] ss:$28 sps:$4 sm:$0xff]  }
 0x226   :  { %2489 = vmatprep.subr.bf16.mxu0 %v3408_v43  ;;  %v3471_v43 = vld [vmem:[%s4678_s8 + $0x204] ss:$28 sps:$4 sm:$0xff]  }
 0x229   :  { %2490 = vmatpush1.bf16.msra.mxu0 %v3406_v44  ;;  %v3466_v44 = vld [vmem:[%s4678_s8 + $0x1f8] ss:$28 sps:$4 sm:$0xff]  }
 0x22a   :  { %2491 = vmatprep.subr.bf16.mxu0 %v3414_v45  ;;  %v3469_v45 = vld [vmem:[%s4678_s8 + $0x200] ss:$28 sps:$4 sm:$0xff]  }
 0x22d   :  { %2492 = vmatpush1.bf16.msra.mxu0 %v3412_v46  ;;  %v3474_v46 = vld [vmem:[%s4678_s8 + $0x1c4] ss:$28 sps:$4 sm:$0xff]  }
 0x22e   :  { %2493 = vmatprep.subr.bf16.mxu0 %v3420_v47  ;;  %v3477_v47 = vld [vmem:[%s4678_s8 + $0x1cc] ss:$28 sps:$4 sm:$0xff]  }
 0x2d8   :  { %v1323_v50 = vpop.f32.mrf.mxu0 }
 0x2d9   :  { %v1324_v51 = vadd.f32 %v1323_v50, %v1122_v48  ;;  %v3418_v48 = vld [vmem:[%s4678_s8 + $0x38] ss:$28 sps:$4 sm:$0xff]   ;;  %v3424_v50 = vld [vmem:[%s4678_s8] ss:$28 sps:$4 sm:$0xff]  }
 0x2da   :  { %v1325_v52 = vpop.f32.mrf.mxu0  ;;  %2494 = vmatpush1.bf16.msra.mxu0 %v3418_v48  ;;  %v3472_v48 = vld [vmem:[%s4678_s8 + $0x1c0] ss:$28 sps:$4 sm:$0xff]  }
 0x2db   :  { %2678 = vst [vmem:[%s4680_s10] sm:$0xff] %v1324_v51  ;;  %v1326_v53 = vadd.f32 %v1325_v52, %v1126_v49  ;;  %v3426_v49 = vld [vmem:[%s4678_s8 + $0x4] ss:$28 sps:$4 sm:$0xff]  }
 0x2dc   :  { %v1327_v54 = vpop.f32.mrf.mxu0  ;;  %2495 = vmatprep.subr.bf16.mxu0 %v3426_v49  ;;  %v3430_v52 = vld [vmem:[%s4678_s8 + $0x348] ss:$28 sps:$4 sm:$0xff]  }
 0x2dd   :  { %v1332_v57 = vmul.f32 0.5, %v1326_v53  ;;  %2679 = vst [vmem:[%s4680_s10 + $0x8] sm:$0xff] %v1326_v53  ;;  %v3438_v53 = vld [vmem:[%s4678_s8 + $0x314] ss:$28 sps:$4 sm:$0xff]   ;;  %v3475_v49 = vld [vmem:[%s4678_s8 + $0x1c8] ss:$28 sps:$4 sm:$0xff]  }
 0x2de   :  { %v1328_v59 = vpop.f32.mrf.mxu0  ;;  %2496 = vmatpush1.bf16.msra.mxu0 %v3424_v50  ;;  %v3436_v54 = vld [vmem:[%s4678_s8 + $0x310] ss:$28 sps:$4 sm:$0xff]   ;;  %v3480_v50 = vld [vmem:[%s4678_s8 + $0x19c] ss:$28 sps:$4 sm:$0xff]  }
 0x2df   :  { %v1333_v60 = vmul.f32 1.442695, %v1332_v57  ;;  %v3444_v57 = vld [vmem:[%s4678_s8 + $0x2dc] ss:$28 sps:$4 sm:$0xff]  }
 0x2e0   :  { %v3442_v59 = vld [vmem:[%s4678_s8 + $0x2d8] ss:$28 sps:$4 sm:$0xff]  }
 0x2e1   :  { %3542 = vpow2.f32 %v1333_v60  ;;  %v3450_v60 = vld [vmem:[%s4678_s8 + $0x2a4] ss:$28 sps:$4 sm:$0xff]  }
 0x2ee   :  { %v3543_v63 = vpop.eup %3542 }
 0x2ef   :  { %v1335_v0 = vmul.f32 %v3543_v63, %v1331_v62  ;;  %v3456_v62 = vld [vmem:[%s4678_s8 + $0x26c] ss:$28 sps:$4 sm:$0xff]  }
 0x2f0   :  { %v3454_v63 = vld [vmem:[%s4678_s8 + $0x268] ss:$28 sps:$4 sm:$0xff]  }
 0x2f1   :  { %v1336_v1 = vadd.f32 %v1335_v0, %v1324_v51  ;;  %v3432_v51 = vld [vmem:[%s4678_s8 + $0x34c] ss:$28 sps:$4 sm:$0xff]   ;;  %v3462_v0 = vld [vmem:[%s4678_s8 + $0x234] ss:$28 sps:$4 sm:$0xff]  }
 0x2f2   :  { %2497 = vmatprep.subr.bf16.mxu0 %v3432_v51  ;;  %v3481_v51 = vld [vmem:[%s4678_s8 + $0x360] ss:$28 sps:$4 sm:$0xff]  }
 0x2f3   :  { %v1337_v3 = vpack.c.bf16 %v1336_v1, %v1336_v1  ;;  %2498 = vmatpush2.bf16.msra.mxu0 %v3430_v52  ;;  %v3460_v1 = vld [vmem:[%s4678_s8 + $0x230] ss:$28 sps:$4 sm:$0xff]   ;;  %v1523_v52 = vld [vmem:[%s4672_s2 + $0x8] sm:$0x3] }
 0x2f4   :  { %2499 = vmatprep.subr.bf16.mxu0 %v3438_v53  ;;  %v1528_v53 = vrot.slane %v1523_v52, %v4119_v56 }
 0x2f5   :  { %1479 = vmatmul.mubr.bf16.vlgmr.msra.gmra.mxu1 %v1337_v3 }
 0x2f6   :  { %1696 = vmatpush1.bf16.msra.mxu1 %v3334_v2  ;;  %v1354_v2 = vld [vmem:[%s4672_s2 + $0x6] sm:$0x3] }
 0x2f7   :  { %1697 = vmatprep.subr.bf16.mxu1 %v3339_v4  ;;  %2500 = vmatpush2.bf16.msra.mxu0 %v3436_v54  ;;  %v1359_v3 = vrot.slane %v1354_v2, %v4119_v56  ;;  %v1363_v4 = vrot.slane %v1354_v2, %v4125_v58  ;;  %v1532_v54 = vrot.slane %v1523_v52, %v4125_v58  ;;  %v1868_v52 = vld [vmem:[%s4672_s2 + $0xa] sm:$0x7f]  ;;  %s3567_s2 = smov [#allocation2]  }
 0x2f8   :  { %2501 = vmatprep.subr.bf16.mxu0 %v3444_v57 }
 0x2fa   :  { %1698 = vmatpush1.bf16.msra.mxu1 %v3337_v5 }
 0x2fb   :  { %1699 = vmatprep.subr.bf16.mxu1 %v3342_v6  ;;  %2502 = vmatpush2.bf16.msra.mxu0 %v3442_v59 }
 0x2fc   :  { %2503 = vmatprep.subr.bf16.mxu0 %v3450_v60 }
 0x2fe   :  { %1700 = vmatpush1.bf16.msra.mxu1 %v3340_v7 }
 0x2ff   :  { %1701 = vmatprep.subr.bf16.mxu1 %v3345_v8  ;;  %2504 = vmatpush2.bf16.msra.mxu0 %v3448_v61 }
 0x300   :  { %2505 = vmatprep.subr.bf16.mxu0 %v3456_v62 }
 0x302   :  { %1702 = vmatpush1.bf16.msra.mxu1 %v3343_v9 }
 0x303   :  { %1703 = vmatprep.subr.bf16.mxu1 %v3348_v10  ;;  %2506 = vmatpush2.bf16.msra.mxu0 %v3454_v63 }
 0x304   :  { %2507 = vmatprep.subr.bf16.mxu0 %v3462_v0 }
 0x306   :  { %1704 = vmatpush1.bf16.msra.mxu1 %v3346_v11 }
 0x307   :  { %1705 = vmatprep.subr.bf16.mxu1 %v3351_v12  ;;  %2508 = vmatpush2.bf16.msra.mxu0 %v3460_v1 }
 0x308   :  { %2509 = vmatprep.subr.bf16.mxu0 %v3468_v42  ;;  %v3532_v42 = vld [vmem:[%s4678_s8 + $0x27c] ss:$28 sps:$4 sm:$0xff]  }
 0x30a   :  { %1706 = vmatpush1.bf16.msra.mxu1 %v3349_v13 }
 0x30b   :  { %1707 = vmatprep.subr.bf16.mxu1 %v3354_v14  ;;  %v3385_v14 = vld [vmem:[%s4678_s8 + $0x190] ss:$28 sps:$4 sm:$0xff]   ;;  %2510 = vmatpush2.bf16.msra.mxu0 %v3466_v44  ;;  %v3535_v44 = vld [vmem:[%s4678_s8 + $0x244] ss:$28 sps:$4 sm:$0xff]  }
 0x30c   :  { %2511 = vmatprep.subr.bf16.mxu0 %v3474_v46  ;;  %v3538_v46 = vld [vmem:[%s4678_s8 + $0x20c] ss:$28 sps:$4 sm:$0xff]  }
 0x30e   :  { %1708 = vmatpush1.bf16.msra.mxu1 %v3352_v15 }
 0x30f   :  { %1709 = vmatprep.subr.bf16.mxu1 %v3357_v17  ;;  %v3393_v17 = vld [vmem:[%s4678_s8 + $0x15c] ss:$28 sps:$4 sm:$0xff]   ;;  %2512 = vmatpush2.bf16.msra.mxu0 %v3472_v48  ;;  %v3541_v48 = vld [vmem:[%s4678_s8 + $0x1d4] ss:$28 sps:$4 sm:$0xff]  }
 0x310   :  { %2563 = vmatprep.subr.bf16.mxu0 %v3480_v50  ;;  %v1880_v50 = vsub.s32 2, %v4116_v55 }
 0x312   :  { %1710 = vmatpush1.bf16.msra.mxu1 %v3355_v16  ;;  %v3391_v16 = vld [vmem:[%s4678_s8 + $0x158] ss:$28 sps:$4 sm:$0xff]  }
 0x313   :  { %1711 = vmatprep.subr.bf16.mxu1 %v3360_v18  ;;  %v3399_v18 = vld [vmem:[%s4678_s8 + $0x124] ss:$28 sps:$4 sm:$0xff]  }
 0x316   :  { %1712 = vmatpush2.bf16.msra.mxu1 %v3358_v19  ;;  %v3397_v19 = vld [vmem:[%s4678_s8 + $0x120] ss:$28 sps:$4 sm:$0xff]  }
 0x317   :  { %1713 = vmatprep.subr.bf16.mxu1 %v3363_v20  ;;  %v3405_v20 = vld [vmem:[%s4678_s8 + $0xec] ss:$28 sps:$4 sm:$0xff]  }
 0x31a   :  { %1714 = vmatpush2.bf16.msra.mxu1 %v3361_v21  ;;  %v3403_v21 = vld [vmem:[%s4678_s8 + $0xe8] ss:$28 sps:$4 sm:$0xff]  }
 0x31b   :  { %1715 = vmatprep.subr.bf16.mxu1 %v3366_v22  ;;  %v3411_v22 = vld [vmem:[%s4678_s8 + $0xb4] ss:$28 sps:$4 sm:$0xff]  }
 0x31e   :  { %1716 = vmatpush2.bf16.msra.mxu1 %v3364_v23  ;;  %v3409_v23 = vld [vmem:[%s4678_s8 + $0xb0] ss:$28 sps:$4 sm:$0xff]  }
 0x31f   :  { %1717 = vmatprep.subr.bf16.mxu1 %v3369_v24  ;;  %v3417_v24 = vld [vmem:[%s4678_s8 + $0x7c] ss:$28 sps:$4 sm:$0xff]  }
 0x322   :  { %1718 = vmatpush2.bf16.msra.mxu1 %v3367_v25  ;;  %v3415_v25 = vld [vmem:[%s4678_s8 + $0x78] ss:$28 sps:$4 sm:$0xff]  }
 0x323   :  { %1719 = vmatprep.subr.bf16.mxu1 %v3372_v26  ;;  %v3423_v26 = vld [vmem:[%s4678_s8 + $0x44] ss:$28 sps:$4 sm:$0xff]  }
 0x326   :  { %1720 = vmatpush2.bf16.msra.mxu1 %v3370_v27  ;;  %v3421_v27 = vld [vmem:[%s4678_s8 + $0x40] ss:$28 sps:$4 sm:$0xff]  }
 0x327   :  { %1721 = vmatprep.subr.bf16.mxu1 %v3375_v28  ;;  %v3429_v28 = vld [vmem:[%s4678_s8 + $0xc] ss:$28 sps:$4 sm:$0xff]  }
 0x32a   :  { %1722 = vmatpush2.bf16.msra.mxu1 %v3373_v29  ;;  %v3427_v29 = vld [vmem:[%s4678_s8 + $0x8] ss:$28 sps:$4 sm:$0xff]  }
 0x32b   :  { %1723 = vmatprep.subr.bf16.mxu1 %v3378_v30  ;;  %v3435_v30 = vld [vmem:[%s4678_s8 + $0x354] ss:$28 sps:$4 sm:$0xff]  }
 0x32e   :  { %1724 = vmatpush2.bf16.msra.mxu1 %v3376_v31  ;;  %v3433_v31 = vld [vmem:[%s4678_s8 + $0x350] ss:$28 sps:$4 sm:$0xff]  }
 0x32f   :  { %1725 = vmatprep.subr.bf16.mxu1 %v3381_v32  ;;  %v3441_v32 = vld [vmem:[%s4678_s8 + $0x31c] ss:$28 sps:$4 sm:$0xff]  }
 0x332   :  { %1726 = vmatpush2.bf16.msra.mxu1 %v3379_v33  ;;  %v3439_v33 = vld [vmem:[%s4678_s8 + $0x318] ss:$28 sps:$4 sm:$0xff]  }
 0x333   :  { %2522 = vmatprep.subr.bf16.mxu1 %v3387_v36  ;;  %v3453_v36 = vld [vmem:[%s4678_s8 + $0x2ac] ss:$28 sps:$4 sm:$0xff]  }
 0x3b5   :  { %v1480_v5 = vpop.f32.mrf.mxu1 }
 0x3b6   :  { %v1481_v6 = vadd.f32 %v1480_v5, %v1359_v3  ;;  %v3478_v3 = vld [vmem:[%s4678_s8 + $0x198] ss:$28 sps:$4 sm:$0xff]  }
 0x3b7   :  { %v1482_v7 = vpop.f32.mrf.mxu1 }
 0x3b8   :  { %v1483_v8 = vadd.f32 %v1482_v7, %v1363_v4  ;;  %v1487_v9 = vmax.f32 %v1481_v6, 0.0  ;;  %v3482_v4 = vld [vmem:[%s4678_s8 + $0x1a0] ss:$28 sps:$4 sm:$0xff]   ;;  %v3486_v7 = vld [vmem:[%s4678_s8 + $0x328] ss:$28 sps:$4 sm:$0xff]  }
 0x3b9   :  { %v1484_v10 = vpop.f32.mrf.mxu1  ;;  %v3485_v6 = vld [vmem:[%s4678_s8 + $0x164] ss:$28 sps:$4 sm:$0xff]  }
 0x3ba   :  { %v1488_v11 = vmax.f32 %v1483_v8, 0.0  ;;  %v1489_v15 = vpack.c.bf16 %v1487_v9, %v1487_v9  ;;  %v3483_v8 = vld [vmem:[%s4678_s8 + $0x160] ss:$28 sps:$4 sm:$0xff]   ;;  %v3487_v9 = vld [vmem:[%s4678_s8 + $0x168] ss:$28 sps:$4 sm:$0xff]  }
 0x3bb   :  { %v1485_v12 = vpop.f32.mrf.mxu1  ;;  %v3490_v10 = vld [vmem:[%s4678_s8 + $0x12c] ss:$28 sps:$4 sm:$0xff]  }
 0x3bc   :  { %v1490_v13 = vpack.c.bf16 %v1488_v11, %v1488_v11  ;;  %v3491_v11 = vld [vmem:[%s4678_s8 + $0x2f0] ss:$28 sps:$4 sm:$0xff]   ;;  %v3488_v12 = vld [vmem:[%s4678_s8 + $0x128] ss:$28 sps:$4 sm:$0xff]  }
 0x3be   :  { %1727 = vmatprep.mubr.bf16.mxu1 %v1490_v13  ;;  %v3492_v13 = vld [vmem:[%s4678_s8 + $0x130] ss:$28 sps:$4 sm:$0xff]  }
 0x3bf   :  { %1728 = vmatmul.mubr.bf16.vlgmr.msra.gmra.mxu1 %v1489_v15  ;;  %v3496_v15 = vld [vmem:[%s4678_s8 + $0x2b8] ss:$28 sps:$4 sm:$0xff]  }
 0x3c0   :  { %2523 = vmatpush1.bf16.msra.mxu1 %v3385_v14  ;;  %v3495_v14 = vld [vmem:[%s4678_s8 + $0xf4] ss:$28 sps:$4 sm:$0xff]  }
 0x3c1   :  { %2524 = vmatprep.subr.bf16.mxu1 %v3393_v17  ;;  %v3493_v17 = vld [vmem:[%s4678_s8 + $0xf0] ss:$28 sps:$4 sm:$0xff]  }
 0x3c4   :  { %2525 = vmatpush1.bf16.msra.mxu1 %v3391_v16  ;;  %v3497_v16 = vld [vmem:[%s4678_s8 + $0xf8] ss:$28 sps:$4 sm:$0xff]  }
 0x3c5   :  { %2526 = vmatprep.subr.bf16.mxu1 %v3399_v18  ;;  %v3500_v18 = vld [vmem:[%s4678_s8 + $0xbc] ss:$28 sps:$4 sm:$0xff]  }
 0x3c8   :  { %2527 = vmatpush1.bf16.msra.mxu1 %v3397_v19  ;;  %v3501_v19 = vld [vmem:[%s4678_s8 + $0x280] ss:$28 sps:$4 sm:$0xff]  }
 0x3c9   :  { %2528 = vmatprep.subr.bf16.mxu1 %v3405_v20  ;;  %v3498_v20 = vld [vmem:[%s4678_s8 + $0xb8] ss:$28 sps:$4 sm:$0xff]  }
 0x3cc   :  { %2529 = vmatpush1.bf16.msra.mxu1 %v3403_v21  ;;  %v3502_v21 = vld [vmem:[%s4678_s8 + $0xc0] ss:$28 sps:$4 sm:$0xff]  }
 0x3cd   :  { %2530 = vmatprep.subr.bf16.mxu1 %v3411_v22  ;;  %v3505_v22 = vld [vmem:[%s4678_s8 + $0x84] ss:$28 sps:$4 sm:$0xff]  }
 0x3d0   :  { %2531 = vmatpush1.bf16.msra.mxu1 %v3409_v23  ;;  %v3506_v23 = vld [vmem:[%s4678_s8 + $0x248] ss:$28 sps:$4 sm:$0xff]  }
 0x3d1   :  { %2532 = vmatprep.subr.bf16.mxu1 %v3417_v24  ;;  %v3503_v24 = vld [vmem:[%s4678_s8 + $0x80] ss:$28 sps:$4 sm:$0xff]  }
 0x3d4   :  { %2533 = vmatpush1.bf16.msra.mxu1 %v3415_v25  ;;  %v3507_v25 = vld [vmem:[%s4678_s8 + $0x88] ss:$28 sps:$4 sm:$0xff]  }
 0x3d5   :  { %2534 = vmatprep.subr.bf16.mxu1 %v3423_v26  ;;  %v3510_v26 = vld [vmem:[%s4678_s8 + $0x4c] ss:$28 sps:$4 sm:$0xff]  }
 0x3d8   :  { %2535 = vmatpush1.bf16.msra.mxu1 %v3421_v27  ;;  %v3511_v27 = vld [vmem:[%s4678_s8 + $0x210] ss:$28 sps:$4 sm:$0xff]  }
 0x3d9   :  { %2536 = vmatprep.subr.bf16.mxu1 %v3429_v28  ;;  %v3508_v28 = vld [vmem:[%s4678_s8 + $0x48] ss:$28 sps:$4 sm:$0xff]  }
 0x3dc   :  { %2537 = vmatpush1.bf16.msra.mxu1 %v3427_v29  ;;  %v3512_v29 = vld [vmem:[%s4678_s8 + $0x50] ss:$28 sps:$4 sm:$0xff]  }
 0x3dd   :  { %2538 = vmatprep.subr.bf16.mxu1 %v3435_v30  ;;  %v3515_v30 = vld [vmem:[%s4678_s8 + $0x14] ss:$28 sps:$4 sm:$0xff]  }
 0x3e0   :  { %2539 = vmatpush2.bf16.msra.mxu1 %v3433_v31  ;;  %v3516_v31 = vld [vmem:[%s4678_s8 + $0x1d8] ss:$28 sps:$4 sm:$0xff]  }
 0x3e1   :  { %2540 = vmatprep.subr.bf16.mxu1 %v3441_v32  ;;  %v3513_v32 = vld [vmem:[%s4678_s8 + $0x10] ss:$28 sps:$4 sm:$0xff]  }
 0x3e4   :  { %2541 = vmatpush2.bf16.msra.mxu1 %v3439_v33  ;;  %v3517_v33 = vld [vmem:[%s4678_s8 + $0x18] ss:$28 sps:$4 sm:$0xff]  }
 0x3e5   :  { %2542 = vmatprep.subr.bf16.mxu1 %v3447_v34  ;;  %v3520_v34 = vld [vmem:[%s4678_s8 + $0x35c] ss:$28 sps:$4 sm:$0xff]  }
 0x3e8   :  { %2543 = vmatpush2.bf16.msra.mxu1 %v3445_v35  ;;  %v3518_v35 = vld [vmem:[%s4678_s8 + $0x358] ss:$28 sps:$4 sm:$0xff]  }
 0x3e9   :  { %2544 = vmatprep.subr.bf16.mxu1 %v3453_v36  ;;  %v3523_v36 = vld [vmem:[%s4678_s8 + $0x324] ss:$28 sps:$4 sm:$0xff]  }
 0x3ec   :  { %2545 = vmatpush2.bf16.msra.mxu1 %v3451_v37  ;;  %v3521_v37 = vld [vmem:[%s4678_s8 + $0x320] ss:$28 sps:$4 sm:$0xff]  }
 0x3ed   :  { %2546 = vmatprep.subr.bf16.mxu1 %v3459_v38  ;;  %v3526_v38 = vld [vmem:[%s4678_s8 + $0x2ec] ss:$28 sps:$4 sm:$0xff]  }
 0x3f0   :  { %2547 = vmatpush2.bf16.msra.mxu1 %v3457_v39  ;;  %v3524_v39 = vld [vmem:[%s4678_s8 + $0x2e8] ss:$28 sps:$4 sm:$0xff]  }
 0x3f1   :  { %2548 = vmatprep.subr.bf16.mxu1 %v3465_v40  ;;  %v3529_v40 = vld [vmem:[%s4678_s8 + $0x2b4] ss:$28 sps:$4 sm:$0xff]  }
 0x3f4   :  { %2549 = vmatpush2.bf16.msra.mxu1 %v3463_v41  ;;  %v3527_v41 = vld [vmem:[%s4678_s8 + $0x2b0] ss:$28 sps:$4 sm:$0xff]  }
 0x3f5   :  { %2550 = vmatprep.subr.bf16.mxu1 %v3471_v43  ;;  %v3530_v43 = vld [vmem:[%s4678_s8 + $0x278] ss:$28 sps:$4 sm:$0xff]  }
 0x3f8   :  { %2551 = vmatpush2.bf16.msra.mxu1 %v3469_v45  ;;  %v3533_v45 = vld [vmem:[%s4678_s8 + $0x240] ss:$28 sps:$4 sm:$0xff]  }
 0x3f9   :  { %2552 = vmatprep.subr.bf16.mxu1 %v3477_v47  ;;  %v3536_v47 = vld [vmem:[%s4678_s8 + $0x208] ss:$28 sps:$4 sm:$0xff]  }
 0x3fc   :  { %2553 = vmatpush2.bf16.msra.mxu1 %v3475_v49  ;;  %v3539_v49 = vld [vmem:[%s4678_s8 + $0x1d0] ss:$28 sps:$4 sm:$0xff]   ;;  %s2686_s8 = sshll.u32 %s3567_s2, 4  ;;  %s2687_s8 = int_to_ptr.vmem [resolvable:$true] %s2686_s8 }
 0x3fd   :  { %3036 = vmatprep.subr.bf16.mxu1 %v3481_v51  ;;  %v1884_v51 = vsub.s32 3, %v4116_v55  ;;  %s3544_s15 = scalar_lea.vmem %s2687_s8, 448  ;;  %p3549_p1 = scmp.lt.s32.totalorder %s2687_s8, %s2687_s8 }
 0x3fe   :  { %p3545_p0 = scmp.ne.s32.totalorder %s2687_s8, %s3544_s15  ;;  %p3550_p2 = scmp.lt.s32.totalorder %s3544_s15, %s3544_s15 }
 0x400   :  { %p3551_p3 = por %p3550_p2, %p3549_p1 }
 0x402   :  { %p3552_p4 = pnand %p3551_p3, %p3545_p0 }
 0x47f   :  { %v1729_v57 = vpop.f32.mrf.mxu1 }
 0x480   :  { %v1730_v59 = vadd.f32 %v1729_v57, %v1528_v53  ;;  %v1873_v53 = vrot.slane %v1868_v52, %v4119_v56  ;;  %v1877_v57 = vrot.slane %v1868_v52, %v4125_v58  ;;  %v1896_v56 = vsub.s32 6, %v4116_v55 }
 0x481   :  { %v1731_v60 = vpop.f32.mrf.mxu1 }
 0x482   :  { %v1732_v61 = vadd.f32 %v1731_v60, %v1532_v54  ;;  %v1736_v62 = vmax.f32 %v1730_v59, 0.0  ;;  %v1881_v54 = vrot.slane %v1868_v52, %v1880_v50  ;;  %v1885_v59 = vrot.slane %v1868_v52, %v1884_v51 }
 0x483   :  { %v1733_v63 = vpop.f32.mrf.mxu1 }
 0x484   :  { %v1737_v0 = vmax.f32 %v1732_v61, 0.0  ;;  %v4519_v5 = vpack.c.bf16 %v1736_v62, %v1736_v62 }
 0x485   :  { %v1734_v1 = vpop.f32.mrf.mxu1 }
 0x486   :  { %v1739_v2 = vpack.c.bf16 %v1737_v0, %v1737_v0 }
 0x488   :  { %2513 = vmatprep.mubr.bf16.mxu0 %v1739_v2  ;;  %2554 = vmatprep.mubr.bf16.mxu1 %v1739_v2 }
 0x489   :  { %2514 = vmatmul.mubr.bf16.vlgmr.msra.gmra.mxu0 %v4519_v5  ;;  %2555 = vmatmul.mubr.bf16.vlgmr.msra.gmra.mxu1 %v4519_v5 }
 0x48a   :  { %2564 = vmatpush1.bf16.msra.mxu0 %v3478_v3  ;;  %3037 = vmatpush3.bf16.msra.mxu1 %v3482_v4 }
 0x48b   :  { %2595 = vmatprep.mubr.bf16.mxu0 %v1739_v2  ;;  %2636 = vmatprep.mubr.bf16.mxu1 %v1739_v2 }
 0x48c   :  { %2565 = vmatprep.subr.bf16.mxu0 %v3485_v6  ;;  %3038 = vmatprep.subr.bf16.mxu1 %v3486_v7 }
 0x48e   :  { %2566 = vmatpush1.bf16.msra.mxu0 %v3483_v8  ;;  %3039 = vmatpush3.bf16.msra.mxu1 %v3487_v9 }
 0x48f   :  { %2567 = vmatprep.subr.bf16.mxu0 %v3490_v10  ;;  %3040 = vmatprep.subr.bf16.mxu1 %v3491_v11  ;;  %v1897_v10 = vrot.slane %v1868_v52, %v1896_v56 }
 0x492   :  { %2568 = vmatpush1.bf16.msra.mxu0 %v3488_v12  ;;  %3041 = vmatpush3.bf16.msra.mxu1 %v3492_v13 }
 0x493   :  { %2569 = vmatprep.subr.bf16.mxu0 %v3495_v14  ;;  %3042 = vmatprep.subr.bf16.mxu1 %v3496_v15 }
 0x496   :  { %2570 = vmatpush1.bf16.msra.mxu0 %v3493_v17  ;;  %3043 = vmatpush3.bf16.msra.mxu1 %v3497_v16  ;;  %v1888_v16 = vsub.s32 4, %v4116_v55 }
 0x497   :  { %2571 = vmatprep.subr.bf16.mxu0 %v3500_v18  ;;  %3044 = vmatprep.subr.bf16.mxu1 %v3501_v19  ;;  %v1892_v18 = vsub.s32 5, %v4116_v55 }
 0x498   :  { %v1889_v19 = vrot.slane %v1868_v52, %v1888_v16 }
 0x49a   :  { %2572 = vmatpush1.bf16.msra.mxu0 %v3498_v20  ;;  %3045 = vmatpush3.bf16.msra.mxu1 %v3502_v21  ;;  %v1893_v20 = vrot.slane %v1868_v52, %v1892_v18 }
 0x49b   :  { %2573 = vmatprep.subr.bf16.mxu0 %v3505_v22  ;;  %3046 = vmatprep.subr.bf16.mxu1 %v3506_v23 }
 0x49e   :  { %2574 = vmatpush1.bf16.msra.mxu0 %v3503_v24  ;;  %3047 = vmatpush3.bf16.msra.mxu1 %v3507_v25 }
 0x49f   :  { %2575 = vmatprep.subr.bf16.mxu0 %v3510_v26  ;;  %3048 = vmatprep.subr.bf16.mxu1 %v3511_v27 }
 0x4a2   :  { %2576 = vmatpush1.bf16.msra.mxu0 %v3508_v28  ;;  %3049 = vmatpush3.bf16.msra.mxu1 %v3512_v29 }
 0x4a3   :  { %2577 = vmatprep.subr.bf16.mxu0 %v3515_v30  ;;  %3050 = vmatprep.subr.bf16.mxu1 %v3516_v31 }
 0x4a6   :  { %2578 = vmatpush1.bf16.msra.mxu0 %v3513_v32  ;;  %3051 = vmatpush3.bf16.msra.mxu1 %v3517_v33 }
 0x4a7   :  { %2579 = vmatprep.subr.bf16.mxu0 %v3520_v34 }
 0x4a9   :  { %2637 = vmatmul.mubr.bf16.vlgmr.msra.gmra.mxu1 %v4519_v5 }
 0x4aa   :  { %2580 = vmatpush2.bf16.msra.mxu0 %v3518_v35 }
 0x4ab   :  { %2581 = vmatprep.subr.bf16.mxu0 %v3523_v36 }
 0x4ae   :  { %2582 = vmatpush2.bf16.msra.mxu0 %v3521_v37 }
 0x4af   :  { %2583 = vmatprep.subr.bf16.mxu0 %v3526_v38 }
 0x4b2   :  { %2584 = vmatpush2.bf16.msra.mxu0 %v3524_v39 }
 0x4b3   :  { %2585 = vmatprep.subr.bf16.mxu0 %v3529_v40 }
 0x4b6   :  { %2586 = vmatpush2.bf16.msra.mxu0 %v3527_v41 }
 0x4b7   :  { %2587 = vmatprep.subr.bf16.mxu0 %v3532_v42 }
 0x4ba   :  { %2588 = vmatpush2.bf16.msra.mxu0 %v3530_v43 }
 0x4bb   :  { %2589 = vmatprep.subr.bf16.mxu0 %v3535_v44 }
 0x4be   :  { %2590 = vmatpush2.bf16.msra.mxu0 %v3533_v45 }
 0x4bf   :  { %2591 = vmatprep.subr.bf16.mxu0 %v3538_v46 }
 0x4c2   :  { %2592 = vmatpush2.bf16.msra.mxu0 %v3536_v47 }
 0x4c3   :  { %2593 = vmatprep.subr.bf16.mxu0 %v3541_v48 }
 0x4c6   :  { %2594 = vmatpush2.bf16.msra.mxu0 %v3539_v49 }
 0x4c9   :  { %2596 = vmatmul.mubr.bf16.vlgmr.msra.gmra.mxu0 %v4519_v5 }
 0x549   :  { %v2515_v60 = vpop.f32.mrf.mxu0  ;;  %v2556_v61 = vpop.f32.mrf.mxu1 }
 0x54a   :  { %v2516_v0 = vadd.f32 %v2515_v60, %v1873_v53  ;;  %v2557_v1 = vadd.f32 %v2556_v61, %v1881_v54 }
 0x54b   :  { %v2517_v62 = vpop.f32.mrf.mxu0  ;;  %v2558_v63 = vpop.f32.mrf.mxu1 }
 0x54c   :  { %v2518_v2 = vadd.f32 %v2517_v62, %v1877_v57  ;;  %v2559_v3 = vadd.f32 %v2558_v63, %v1885_v59 }
 0x54d   :  { %v2519_v4 = vpop.f32.mrf.mxu0  ;;  %v2560_v5 = vpop.f32.mrf.mxu1 }
 0x54e   :  { %v3032_v6 = vpack.c.bf16 %v2518_v2, %v2516_v0  ;;  %v3033_v7 = vpack.c.bf16 %v2559_v3, %v2557_v1 }
 0x54f   :  { %v2520_v8 = vpop.f32.mrf.mxu0  ;;  %v2561_v9 = vpop.f32.mrf.mxu1 }
 0x550   :  { %2673 = vst [vmem:[#allocation2] sm:$0xff] %v3032_v6  ;;  %2674 = vst [vmem:[#allocation2 + $0x8] sm:$0xff] %v3033_v7 }
 0x569   :  { %v3052_v58 = vpop.f32.mrf.mxu1 }
 0x56b   :  { %v3053_v11 = vpop.f32.mrf.mxu1 }
 0x56c   :  { %v3054_v12 = vadd.f32 %v3053_v11, %v3052_v58 }
 0x56d   :  { %v3055_v13 = vpop.f32.mrf.mxu1 }
 0x56e   :  { %v2639_v14 = vadd.f32 %v3054_v12, %v1897_v10 }
 0x56f   :  { %v3056_v15 = vpop.f32.mrf.mxu1 }
 0x570   :  { %v3035_v17 = vpack.c.bf16 %v2639_v14, %v2639_v14 }
 0x572   :  { %2677 = vst.msk [vmem:[#allocation2 + $0x18] sm:$0xf] %vm2676_vm1, %v3035_v17 }
 0x589   :  { %v2597_v21 = vpop.f32.mrf.mxu0 }
 0x58a   :  { %v2598_v23 = vadd.f32 %v2597_v21, %v1889_v19 }
 0x58b   :  { %v2599_v22 = vpop.f32.mrf.mxu0 }
 0x58c   :  { %v2600_v24 = vadd.f32 %v2599_v22, %v1893_v20 }
 0x58d   :  { %v2601_v25 = vpop.f32.mrf.mxu0 }
 0x58e   :  { %v3034_v26 = vpack.c.bf16 %v2600_v24, %v2598_v23 }
 0x58f   :  { %v2602_v27 = vpop.f32.mrf.mxu0 }
 0x590   :  { %2675 = vst [vmem:[#allocation2 + $0x10] sm:$0xff] %v3034_v26 }
 0x591   :  { %3555 = shalt.err (!%p3552_p4)
}
 0x592   :  { %2689 = dma.vmem_to_hbm [thread:$0]  %s2687_s8, 448, %s4679_s9, [#allocation3]  }
 0x593   :  { %3564 = dma.done.wait [#allocation3], 448  }
 0x594   :  { %3565 = vsyncadd [#allocation3], 4294966848 }
 0x595   :  { %2697 = vsyncpa [#allocation3], 1 }

</bundles_post_ra>
